<compile_context>
chip_gen: v7x
topology: tpu7x:2x2x1
jax: 0.10.0
libtpu: 0.0.40
codegen_flags: <defaults>
</compile_context>

<pallas_src>
import functools

import jax
import jax.numpy as jnp
from jax.experimental import pallas as pl
from jax.experimental.pallas import tpu as pltpu


# ----------------------------------------------------------------------------
# Kernel A: localNet stand-in — 3x3 conv + sigmoid, channel-first output.
# ----------------------------------------------------------------------------
def _local_kernel(x_ref, w_ref, b_ref, o_ref, xp, *, H, W, K, Cin):
    pad = (K - 1) // 2
    # In-kernel zero padding (never materialized in HBM).
    xp[...] = jnp.zeros_like(xp)
    xp[:, pad:pad + H, pad:pad + W] = x_ref[0]

    # Transposed im2col: (K*K*Cin, H*W) so the long spatial dim sits on lanes.
    taps = []
    for ky in range(K):
        for kx in range(K):
            taps.append(xp[:, ky:ky + H, kx:kx + W])
    patch_t = jnp.concatenate(taps, axis=0).reshape(K * K * Cin, H * W)

    # Single fused-tap MXU matmul (bf16 in, f32 accumulate), f32 epilogue.
    y = jnp.dot(w_ref[...], patch_t, preferred_element_type=jnp.float32)
    y = y + b_ref[...]
    o_ref[0] = jax.nn.sigmoid(y)            # lane-dense store (last dim H*W)


def local_net_pallas(x_nchw, w_t, bias, *, K=3):
    """x_nchw: (N,Cin,H,W) bf16; w_t: (Cout,K*K*Cin) bf16; bias: (Cout,1) f32."""
    N, Cin, H, W = x_nchw.shape
    Cout = w_t.shape[0]
    pad = (K - 1) // 2
    kernel = functools.partial(_local_kernel, H=H, W=W, K=K, Cin=Cin)
    return pl.pallas_call(
        kernel,
        out_shape=jax.ShapeDtypeStruct((N, Cout, H * W), jnp.float32),
        grid=(N,),
        in_specs=[
            pl.BlockSpec((1, Cin, H, W), lambda n: (n, 0, 0, 0)),
            pl.BlockSpec((Cout, K * K * Cin), lambda n: (0, 0)),
            pl.BlockSpec((Cout, 1), lambda n: (0, 0)),
        ],
        out_specs=pl.BlockSpec((1, Cout, H * W), lambda n: (n, 0, 0)),
        scratch_shapes=[pltpu.VMEM((Cin, H + 2 * pad, W + 2 * pad), jnp.bfloat16)],
        compiler_params=pltpu.CompilerParams(
            dimension_semantics=("parallel",),
            vmem_limit_bytes=48 * 1024 * 1024),
    )(x_nchw, w_t, bias)


# ----------------------------------------------------------------------------
# Kernel B: fused globalNet (in0/in_local0 + concat + dilated convs + 1x1 out)
#           + GLN head (nearest upsample + sigmoid + multiply with local).
# ----------------------------------------------------------------------------
def _global_kernel(xd_ref, ld_ref, lf_ref,
                   w_in0_ref, b_in0_ref, w_inl_ref, b_inl_ref,
                   w_dil_ref, sc_dil_ref, sh_dil_ref,
                   w_out_ref, b_out_ref,
                   o_ref,
                   px, plc, pmid,
                   *, h2, w2, H, W, K, dilations, mid, Cin, Cloc):
    HW2 = h2 * w2
    P = max((K - 1) * d // 2 for d in dilations)     # padding of the big scratch
    pad_in = (K - 1) // 2
    ca = mid // 2
    cb = mid - ca

    def im2col(buf, off, dil, C):
        # Build the full im2col patch once in VMEM -> one matmul per conv.
        taps = []
        for ky in range(K):
            for kx in range(K):
                taps.append(buf[off + ky * dil: off + ky * dil + h2,
                                off + kx * dil: off + kx * dil + w2, :])
        return jnp.concatenate(taps, axis=-1).reshape(HW2, K * K * C)

    # Zero-filled VMEM padding (no jnp.pad / HBM traffic).
    px[...] = jnp.zeros_like(px)
    plc[...] = jnp.zeros_like(plc)
    pmid[...] = jnp.zeros_like(pmid)
    px[pad_in:pad_in + h2, pad_in:pad_in + w2, :] = xd_ref[0]
    plc[pad_in:pad_in + h2, pad_in:pad_in + w2, :] = ld_ref[0]

    # in0 / in_local0 (3x3 convs) written straight into the fuse buffer at
    # their channel offsets: no jnp.concatenate, no HBM round trip.
    a = jnp.dot(im2col(px, 0, 1, Cin), w_in0_ref[...],
                preferred_element_type=jnp.float32) + b_in0_ref[...]
    b = jnp.dot(im2col(plc, 0, 1, Cloc), w_inl_ref[...],
                preferred_element_type=jnp.float32) + b_inl_ref[...]
    pmid[P:P + h2, P:P + w2, 0:ca] = a.reshape(h2, w2, ca).astype(jnp.bfloat16)
    pmid[P:P + h2, P:P + w2, ca:mid] = b.reshape(h2, w2, cb).astype(jnp.bfloat16)

    # Dilated conv stack: one fused-tap matmul per layer, feature stays in VMEM.
    for i, d in enumerate(dilations):
        pad_l = (K - 1) * d // 2
        patch = im2col(pmid, P - pad_l, d, mid)                  # (HW2, K*K*mid)
        y = jnp.dot(patch, w_dil_ref[i], preferred_element_type=jnp.float32)
        y = y * sc_dil_ref[i] + sh_dil_ref[i]                    # folded BN (f32)
        y = jnp.maximum(y, 0.0)                                  # ReLU (f32)
        pmid[P:P + h2, P:P + w2, :] = y.reshape(h2, w2, mid).astype(jnp.bfloat16)

    # 1x1 out conv.
    feat = pmid[P:P + h2, P:P + w2, :].reshape(HW2, mid)
    g = jnp.dot(feat, w_out_ref[...], preferred_element_type=jnp.float32)
    g = g + b_out_ref[...]                                       # (HW2, Cloc)

    # Fused GLN head: sigmoid -> nearest upsample (integer factor) -> * local.
    s = jax.nn.sigmoid(g)                                        # f32
    s = jnp.transpose(s).reshape(Cloc, h2, w2)                   # channel-first
    ry, rx = H // h2, W // w2
    up = jnp.broadcast_to(s[:, :, None, :], (Cloc, h2, ry, w2)).reshape(Cloc, H, w2)
    up = jnp.broadcast_to(up[:, :, :, None], (Cloc, H, w2, rx)).reshape(Cloc, H * W)
    o_ref[0] = up * lf_ref[0]                                    # lane-dense store


def global_net_pallas(xd, ld, local_flat, gp, *, H, W, K=3, dilations=(1, 2, 5), mid=128):
    N, h2, w2, Cin = xd.shape
    Cloc = ld.shape[-1]
    nd = len(dilations)
    P = max((K - 1) * d // 2 for d in dilations)
    pad_in = (K - 1) // 2
    ca = mid // 2
    cb = mid - ca

    kernel = functools.partial(_global_kernel, h2=h2, w2=w2, H=H, W=W, K=K,
                               dilations=tuple(dilations), mid=mid, Cin=Cin, Cloc=Cloc)
    return pl.pallas_call(
        kernel,
        out_shape=jax.ShapeDtypeStruct((N, Cloc, H * W), jnp.float32),
        grid=(N,),
        in_specs=[
            pl.BlockSpec((1, h2, w2, Cin), lambda n: (n, 0, 0, 0)),
            pl.BlockSpec((1, h2, w2, Cloc), lambda n: (n, 0, 0, 0)),
            pl.BlockSpec((1, Cloc, H * W), lambda n: (n, 0, 0)),
            pl.BlockSpec((K * K * Cin, ca), lambda n: (0, 0)),
            pl.BlockSpec((1, ca), lambda n: (0, 0)),
            pl.BlockSpec((K * K * Cloc, cb), lambda n: (0, 0)),
            pl.BlockSpec((1, cb), lambda n: (0, 0)),
            pl.BlockSpec((nd, K * K * mid, mid), lambda n: (0, 0, 0)),
            pl.BlockSpec((nd, 1, mid), lambda n: (0, 0, 0)),
            pl.BlockSpec((nd, 1, mid), lambda n: (0, 0, 0)),
            pl.BlockSpec((mid, Cloc), lambda n: (0, 0)),
            pl.BlockSpec((1, Cloc), lambda n: (0, 0)),
        ],
        out_specs=pl.BlockSpec((1, Cloc, H * W), lambda n: (n, 0, 0)),
        scratch_shapes=[
            pltpu.VMEM((h2 + 2 * pad_in, w2 + 2 * pad_in, Cin), jnp.bfloat16),
            pltpu.VMEM((h2 + 2 * pad_in, w2 + 2 * pad_in, Cloc), jnp.bfloat16),
            pltpu.VMEM((h2 + 2 * P, w2 + 2 * P, mid), jnp.bfloat16),
        ],
        compiler_params=pltpu.CompilerParams(
            dimension_semantics=("parallel",),
            vmem_limit_bytes=48 * 1024 * 1024),
    )(xd, ld, local_flat,
      gp["in0"]["w"], gp["in0"]["b"], gp["inl0"]["w"], gp["inl0"]["b"],
      gp["dil_w"], gp["dil_scale"], gp["dil_shift"],
      gp["out0"]["w"], gp["out0"]["b"])


# ----------------------------------------------------------------------------
# Deterministic parameter construction (inference-mode BN folded).
# ----------------------------------------------------------------------------
def _fold_bn(bias, gamma, beta, mean, var, eps=1e-5):
    scale = gamma / jnp.sqrt(var + eps)
    shift = (bias - mean) * scale + beta
    return scale, shift


def init_params(key, in_channels, out_channels, dilations=(1, 2, 5), mid=128, K=3):
    nd = len(dilations)
    (kloc_w, kloc_b, kin_w, kin_b, kinl_w, kinl_b,
     kout_w, kout_b, *kdil) = jax.random.split(key, 8 + nd)

    def conv_w(k, cin, cout, ksz):
        return jax.random.normal(k, (ksz, ksz, cin, cout), jnp.float32) * 0.1

    def conv_b(k, cout):
        return jax.random.normal(k, (cout,), jnp.float32) * 0.05

    p = {}
    # localNet stand-in: 3x3 conv (in -> out) + sigmoid; transposed-GEMM layout.
    wl = conv_w(kloc_w, in_channels, out_channels, K)
    p["local"] = {
        "w": jnp.transpose(wl, (3, 0, 1, 2))
                .reshape(out_channels, K * K * in_channels).astype(jnp.bfloat16),
        "b": conv_b(kloc_b, out_channels).reshape(out_channels, 1),
    }

    ca, cb = mid // 2, mid - mid // 2
    g = {}
    g["in0"] = {
        "w": conv_w(kin_w, in_channels, ca, K).reshape(K * K * in_channels, ca)
                .astype(jnp.bfloat16),
        "b": conv_b(kin_b, ca).reshape(1, ca),
    }
    g["inl0"] = {
        "w": conv_w(kinl_w, out_channels, cb, K).reshape(K * K * out_channels, cb)
                .astype(jnp.bfloat16),
        "b": conv_b(kinl_b, cb).reshape(1, cb),
    }

    dw, dsc, dsh = [], [], []
    for kd in kdil:
        kw, kb, kg, kbt, km, kv = jax.random.split(kd, 6)
        w = conv_w(kw, mid, mid, K).reshape(K * K * mid, mid)
        bias = conv_b(kb, mid)
        gamma = 1.0 + 0.1 * jax.random.normal(kg, (mid,), jnp.float32)
        beta = 0.05 * jax.random.normal(kbt, (mid,), jnp.float32)
        mean = 0.05 * jax.random.normal(km, (mid,), jnp.float32)
        var = jnp.abs(1.0 + 0.1 * jax.random.normal(kv, (mid,), jnp.float32))
        scale, shift = _fold_bn(bias, gamma, beta, mean, var)
        dw.append(w.astype(jnp.bfloat16))
        dsc.append(scale.reshape(1, mid))
        dsh.append(shift.reshape(1, mid))
    g["dil_w"] = jnp.stack(dw)           # (nd, K*K*mid, mid) bf16
    g["dil_scale"] = jnp.stack(dsc)      # (nd, 1, mid) f32
    g["dil_shift"] = jnp.stack(dsh)      # (nd, 1, mid) f32

    wo = jax.random.normal(kout_w, (1, 1, mid, out_channels), jnp.float32) * 0.1
    g["out0"] = {"w": wo.reshape(mid, out_channels).astype(jnp.bfloat16),
                 "b": conv_b(kout_b, out_channels).reshape(1, out_channels)}
    p["global"] = g
    return p


# ----------------------------------------------------------------------------
# GLN forward
# ----------------------------------------------------------------------------
def gln_forward(params, x_nchw, task_idx=0, scale_factor=0.25, dilations=(1, 2, 5)):
    del task_idx  # single-task parameter set in this stand-in
    x = x_nchw.astype(jnp.float32)
    N, Cin, H, W = x.shape
    x_bf = x.astype(jnp.bfloat16)

    # ---- localNet: local_feature = sigmoid(conv3x3(x)), stored (N,C,H*W) ----
    lp = params["local"]
    local_flat = local_net_pallas(x_bf, lp["w"], lp["b"], K=3)
    Cout = local_flat.shape[1]

    # ---- nearest downsample (matches F.interpolate mode='nearest') ----------
    h2, w2 = int(H * scale_factor), int(W * scale_factor)
    # TODO(synk): integer upsample factor assumed (true for scale_factor=0.25
    # with H,W divisible by 4); general sizes need a gather-based upsample.
    assert H % h2 == 0 and W % w2 == 0
    hi = jnp.arange(h2) * H // h2
    wi = jnp.arange(w2) * W // w2
    xd = jnp.transpose(x_bf[:, :, hi][:, :, :, wi], (0, 2, 3, 1))   # (N,h2,w2,Cin)
    local_img = local_flat.reshape(N, Cout, H, W)
    ld = jnp.transpose(local_img[:, :, hi][:, :, :, wi],
                       (0, 2, 3, 1)).astype(jnp.bfloat16)           # (N,h2,w2,Cout)

    # ---- fused globalNet + GLN head ------------------------------------------
    out_flat = global_net_pallas(xd, ld, local_flat, params["global"],
                                 H=H, W=W, K=3, dilations=dilations)
    return {"output": out_flat.reshape(N, Cout, H, W)}              # NCHW, free reshape


# ----------------------------------------------------------------------------
if __name__ == "__main__":
    in_channels, out_channels = 4, 2
    N, H, W = 2, 16, 16

    key = jax.random.PRNGKey(0)
    kx, kp = jax.random.split(key)
    x = jax.random.normal(kx, (N, in_channels, H, W), jnp.float32)
    params = init_params(kp, in_channels, out_channels)

    out = gln_forward(params, x)["output"]
    out = jax.block_until_ready(out)
    assert out.shape == (N, out_channels, H, W)
    assert bool(jnp.all(jnp.isfinite(out)))
    print("KERNEL_OK")
</pallas_src>

<mosaic_0001>
module attributes {stable_mosaic.version = 11 : i64} {
  func.func @_local_kernel(%arg0: i32, %arg1: memref<1x4x16x16xbf16, #tpu.memory_space<vmem>>, %arg2: memref<2x36xbf16, #tpu.memory_space<vmem>>, %arg3: memref<2x1xf32, #tpu.memory_space<vmem>>, %arg4: memref<1x2x256xf32, #tpu.memory_space<vmem>>, %arg5: memref<4x18x18xbf16, #tpu.memory_space<vmem>>) attributes {dimension_semantics = [#tpu.dimension_semantics<parallel>], iteration_bounds = array<i64: 2>, scalar_prefetch = 0 : i64, scratch_operands = 1 : i64, tpu.core_type = #tpu.core_type<tc>, window_params = [{transform_indices = @transform_0, window_bounds = array<i64: 1, 4, 16, 16>}, {pipeline_mode = #tpu.pipeline_mode<synchronous>, transform_indices = @transform_1, window_bounds = array<i64: 2, 36>}, {pipeline_mode = #tpu.pipeline_mode<synchronous>, transform_indices = @transform_2, window_bounds = array<i64: 2, 1>}, {transform_indices = @transform_3, window_bounds = array<i64: 1, 2, 256>}]} {
    %cst = arith.constant 0.000000e+00 : bf16
    %0 = vector.broadcast %cst : bf16 to vector<4x18x18xbf16>
    %c0 = arith.constant 0 : index
    %c0_0 = arith.constant 0 : index
    %c0_1 = arith.constant 0 : index
    %1 = vector.load %arg5[%c0, %c0_0, %c0_1] : memref<4x18x18xbf16, #tpu.memory_space<vmem>>, vector<4x18x18xbf16>
    tpu.vector_store %arg5[%c0, %c0_0, %c0_1], %0 {strides = array<i32>} : memref<4x18x18xbf16, #tpu.memory_space<vmem>>, vector<4x18x18xbf16>,
    %c0_2 = arith.constant 0 : index
    %c0_3 = arith.constant 0 : index
    %c0_4 = arith.constant 0 : index
    %c0_5 = arith.constant 0 : index
    %2 = vector.load %arg1[%c0_2, %c0_3, %c0_4, %c0_5] : memref<1x4x16x16xbf16, #tpu.memory_space<vmem>>, vector<1x4x16x16xbf16>
    %3 = vector.shape_cast %2 : vector<1x4x16x16xbf16> to vector<4x16x16xbf16>
    %c0_6 = arith.constant 0 : index
    %c1 = arith.constant 1 : index
    %c1_7 = arith.constant 1 : index
    %4 = vector.load %arg5[%c0_6, %c1, %c1_7] : memref<4x18x18xbf16, #tpu.memory_space<vmem>>, vector<4x16x16xbf16>
    tpu.vector_store %arg5[%c0_6, %c1, %c1_7], %3 {strides = array<i32>} : memref<4x18x18xbf16, #tpu.memory_space<vmem>>, vector<4x16x16xbf16>,
    %c0_8 = arith.constant 0 : index
    %c0_9 = arith.constant 0 : index
    %c0_10 = arith.constant 0 : index
    %5 = vector.load %arg5[%c0_8, %c0_9, %c0_10] : memref<4x18x18xbf16, #tpu.memory_space<vmem>>, vector<4x16x16xbf16>
    %c0_11 = arith.constant 0 : index
    %c0_12 = arith.constant 0 : index
    %c1_13 = arith.constant 1 : index
    %6 = vector.load %arg5[%c0_11, %c0_12, %c1_13] : memref<4x18x18xbf16, #tpu.memory_space<vmem>>, vector<4x16x16xbf16>
    %c0_14 = arith.constant 0 : index
    %c0_15 = arith.constant 0 : index
    %c2 = arith.constant 2 : index
    %7 = vector.load %arg5[%c0_14, %c0_15, %c2] : memref<4x18x18xbf16, #tpu.memory_space<vmem>>, vector<4x16x16xbf16>
    %c0_16 = arith.constant 0 : index
    %c1_17 = arith.constant 1 : index
    %c0_18 = arith.constant 0 : index
    %8 = vector.load %arg5[%c0_16, %c1_17, %c0_18] : memref<4x18x18xbf16, #tpu.memory_space<vmem>>, vector<4x16x16xbf16>
    %c0_19 = arith.constant 0 : index
    %c1_20 = arith.constant 1 : index
    %c1_21 = arith.constant 1 : index
    %9 = vector.load %arg5[%c0_19, %c1_20, %c1_21] : memref<4x18x18xbf16, #tpu.memory_space<vmem>>, vector<4x16x16xbf16>
    %c0_22 = arith.constant 0 : index
    %c1_23 = arith.constant 1 : index
    %c2_24 = arith.constant 2 : index
    %10 = vector.load %arg5[%c0_22, %c1_23, %c2_24] : memref<4x18x18xbf16, #tpu.memory_space<vmem>>, vector<4x16x16xbf16>
    %c0_25 = arith.constant 0 : index
    %c2_26 = arith.constant 2 : index
    %c0_27 = arith.constant 0 : index
    %11 = vector.load %arg5[%c0_25, %c2_26, %c0_27] : memref<4x18x18xbf16, #tpu.memory_space<vmem>>, vector<4x16x16xbf16>
    %c0_28 = arith.constant 0 : index
    %c2_29 = arith.constant 2 : index
    %c1_30 = arith.constant 1 : index
    %12 = vector.load %arg5[%c0_28, %c2_29, %c1_30] : memref<4x18x18xbf16, #tpu.memory_space<vmem>>, vector<4x16x16xbf16>
    %c0_31 = arith.constant 0 : index
    %c2_32 = arith.constant 2 : index
    %c2_33 = arith.constant 2 : index
    %13 = vector.load %arg5[%c0_31, %c2_32, %c2_33] : memref<4x18x18xbf16, #tpu.memory_space<vmem>>, vector<4x16x16xbf16>
    %14 = tpu.concatenate %5, %6, %7, %8, %9, %10, %11, %12, %13 in 0 : vector<4x16x16xbf16>, vector<4x16x16xbf16>, vector<4x16x16xbf16>, vector<4x16x16xbf16>, vector<4x16x16xbf16>, vector<4x16x16xbf16>, vector<4x16x16xbf16>, vector<4x16x16xbf16>, vector<4x16x16xbf16> -> vector<36x16x16xbf16>
    %15 = vector.shape_cast %14 : vector<36x16x16xbf16> to vector<36x256xbf16>
    %c0_34 = arith.constant 0 : index
    %c0_35 = arith.constant 0 : index
    %16 = vector.load %arg2[%c0_34, %c0_35] : memref<2x36xbf16, #tpu.memory_space<vmem>>, vector<2x36xbf16>
    %cst_36 = arith.constant dense<0.000000e+00> : vector<2x256xf32>
    %17 = tpu.matmul %16, %15, %cst_36 {dimension_numbers = #tpu.dot_dimension_numbers<[1], [0], [0], [1], [0, 0, 1, 1], [], []>} : vector<2x36xbf16>, vector<36x256xbf16>, vector<2x256xf32> -> vector<2x256xf32>
    %c0_37 = arith.constant 0 : index
    %c0_38 = arith.constant 0 : index
    %18 = vector.load %arg3[%c0_37, %c0_38] : memref<2x1xf32, #tpu.memory_space<vmem>>, vector<2x1xf32>
    %19 = vector.broadcast %18 : vector<2x1xf32> to vector<2x256xf32>
    %20 = arith.addf %17, %19 : vector<2x256xf32>
    %21 = arith.negf %20 : vector<2x256xf32>
    %22 = math.exp %21 : vector<2x256xf32>
    %cst_39 = arith.constant 1.000000e+00 : f32
    %23 = vector.broadcast %cst_39 : f32 to vector<2x256xf32>
    %24 = arith.addf %23, %22 : vector<2x256xf32>
    %25 = arith.divf %23, %24 : vector<2x256xf32>
    %c0_40 = arith.constant 0 : index
    %c0_41 = arith.constant 0 : index
    %c0_42 = arith.constant 0 : index
    %26 = vector.load %arg4[%c0_40, %c0_41, %c0_42] : memref<1x2x256xf32, #tpu.memory_space<vmem>>, vector<1x2x256xf32>
    %27 = vector.shape_cast %26 : vector<1x2x256xf32> to vector<2x256xf32>
    %28 = vector.shape_cast %25 : vector<2x256xf32> to vector<1x2x256xf32>
    tpu.vector_store %arg4[%c0_40, %c0_41, %c0_42], %28 {strides = array<i32>} : memref<1x2x256xf32, #tpu.memory_space<vmem>>, vector<1x2x256xf32>,
    return
  }
  func.func @transform_0(%arg0: i32) -> (i32, i32, i32, i32) {
    %c0_i32 = arith.constant 0 : i32
    %c0_i32_0 = arith.constant 0 : i32
    %c0_i32_1 = arith.constant 0 : i32
    %c0_i32_2 = arith.constant 0 : i32
    return %arg0, %c0_i32, %c0_i32_0, %c0_i32_1 : i32, i32, i32, i32
  }
  func.func @transform_1(%arg0: i32) -> (i32, i32) {
    %c0_i32 = arith.constant 0 : i32
    %c0_i32_0 = arith.constant 0 : i32
    %c0_i32_1 = arith.constant 0 : i32
    return %c0_i32, %c0_i32_0 : i32, i32
  }
  func.func @transform_2(%arg0: i32) -> (i32, i32) {
    %c0_i32 = arith.constant 0 : i32
    %c0_i32_0 = arith.constant 0 : i32
    %c0_i32_1 = arith.constant 0 : i32
    return %c0_i32, %c0_i32_0 : i32, i32
  }
  func.func @transform_3(%arg0: i32) -> (i32, i32, i32) {
    %c0_i32 = arith.constant 0 : i32
    %c0_i32_0 = arith.constant 0 : i32
    %c0_i32_1 = arith.constant 0 : i32
    return %arg0, %c0_i32, %c0_i32_0 : i32, i32, i32
  }
}

</mosaic_0001>

<bundles_post_ra>
// kernel: tpu_custom_call.1
= control target key start
LH: loop header
LB: loop body
LE: loop exit
PB: predicated region body
PF: predicated region fallthrough
CT: control target
= control target key end

     0   :  { %8 = vsyncpa [#allocation4], 0  ;;  %s3472_s0 = inlined_call_operand.hbm [shape: bf16[2,4,16,16], index: 0, kind: input, shape index: {}]   ;;  %s3473_s1 = inlined_call_operand.vmem [shape: bf16[2,36], index: 1, kind: input, shape index: {}]   ;;  %s3474_s2 = inlined_call_operand.vmem [shape: f32[2,1], index: 2, kind: input, shape index: {}]   ;;  %s3475_s3 = inlined_call_operand.hbm [shape: f32[2,2,256], index: 3, kind: output, shape index: {}]  }
   0x1   :  { %10 = vsyncpa [#allocation4 + $0x1], 0 }
   0x2   :  { %11 = vsyncpa [#allocation5], 0 }
   0x3   :  { %13 = vsyncpa [#allocation5 + $0x1], 0  ;;  %s2416_s12 = smov 0   ;;  %s2418_s13 = smov 0  }
   0x4   :  { %s2420_s14 = smov 0   ;;  %s2422_s15 = smov 0  }
   0x5 LB: > { %s2437_s16 = sadd.s32 4294967295, %s2377_s15   ;;  %s2114_s17 = sadd.s32 4294967294, %s2377_s15   ;;  %s2377_s15 = sphi %s2422_s15, %s3502_s15   ;;  %s2373_s14 = sphi %s2420_s14, %s3501_s14   ;;  %s2369_s13 = sphi %s2418_s13, %s3500_s13   ;;  %s2365_s12 = sphi %s2416_s12, %s3499_s12  }
   0x6   : > { %s2441_s18 = sadd.s32 1, %s2377_s15   ;;  %s26_s19 = sadd.s32 1, %s2373_s14 }
   0x7   : > { %s23_s20 = ssub.s32 %s2377_s15, %s2441_s18  ;;  %p33_p0 = scmp.ne.s32.totalorder %s2373_s14, %s2369_s13 }
   0x8   : > { %p24_p1 = scmp.eq.s32.totalorder %s23_s20, 0  ;;  %p34_p2 = scmp.eq.s32.totalorder %s2377_s15, 0 }
   0x9   : > { %p39_p3 = scmp.ne.s32.totalorder %s2369_s13, %s2365_s12  ;;  %p40_p4 = scmp.eq.s32.totalorder %s2437_s16, 0 }
   0xa   : > { %s2453_s21 = scalar_select %p24_p1, %s2373_s14, %s26_s19  }
   0xb   : > { %p2455_p5 = por %p34_p2, %p33_p0  ;;  %p2459_p6 = por %p40_p4, %p39_p3 }
   0xc   : > { %p105_p7 = scmp.eq.s32.totalorder %s2437_s16, 1  ;;  %p111_p8 = scmp.eq.s32.totalorder %s2114_s17, 1 }
   0xd   : > { %p2223_p10 = scmp.lt.s32.totalorder %s2377_s15, 2  ;;  %s137_s26 = sand.u32 1, %s2373_s14  }
   0xe   : > { %p2466_p11 = por %p105_p7, %p33_p0  ;;  %p2470_p12 = por %p111_p8, %p39_p3 }
   0xf   : > { %s2185_s27 = sshll.u32 %s2377_s15, 9  ;;  %s2117_s28 = sshll.u32 %s137_s26, 5 }
  0x10   : > { %s3479_s24 = scalar_select %p2466_p11, 1, 0 }
  0x11   : > { %s3480_s25 = scalar_select %p2470_p12, 1, 0 }
  0x12   : > { %s2479_s4 = scalar_lea.hbm %s3472_s0, %s2185_s27  ;;  %s141_s5 = scalar_lea.vmem [#allocation3], %s2117_s28 }
  0x13   : > { %s148_s6 = sshll.u32 %s141_s5, 4  ;;  %p2483_p13 = pnand %p2223_p10, %p2455_p5  ;;  %s2487_s6 = int_to_ptr.vmem [resolvable:$true] %s148_s6 }
  0x14   : > { %s2489_s8 = scalar_lea.sflag [#allocation4], %s137_s26  ;;  %s2281_s9 = scalar_lea.hbm %s2479_s4, 512 }
  0x15   : > { %p2282_p0 = scmp.ne.s32.totalorder %s2479_s4, %s2281_s9  ;;  %p2283_p1 = pneg %p2483_p13 }
  0x16   : > { %s2286_s17 = scalar_lea.hbm %s3472_s0, 1024  ;;  %p2287_p4 = scmp.lt.u32.totalorder %s2479_s4, %s3472_s0 }
  0x17   : > { %p2284_p2 = pnand %p2283_p1, %p2282_p0  ;;  %p2288_p5 = scmp.lt.u32.totalorder %s2286_s17, %s2281_s9 }
  0x18   : > { %p2290_p8 = scmp.lt.u32.totalorder %s2281_s9, %s2479_s4 }
  0x19   : > { %p2285_p3 = pneg %p2284_p2  ;;  %p2289_p7 = por %p2288_p5, %p2287_p4 }
  0x1b   : > { %p2291_p10 = por %p2290_p8, %p2289_p7 }
  0x1d   : > { %p2292_p9 = pnand %p2291_p10, %p2285_p3 }
  0x1f   : > { %2295 = shalt.err (!%p2292_p9)
}
  0x20   : > { %s2296_s22 = scalar_lea.vmem %s2487_s6, 512  ;;  %s2379_s26 = smov [#allocation3]  }
  0x21   : > { %p2297_p0 = scmp.ne.s32.totalorder %s2487_s6, %s2296_s22  ;;  %s2301_s27 = sshll.u32 %s2379_s26, 4  ;;  %s2302_s27 = int_to_ptr.vmem [resolvable:$false] %s2301_s27 }
  0x22   : > { %s2303_s28 = scalar_lea.vmem %s2302_s27, 1024  ;;  %p2304_p11 = scmp.lt.s32.totalorder %s2487_s6, %s2302_s27 }
  0x23   : > { %p2299_p2 = pnand %p2297_p0, %p2283_p1  ;;  %p2305_p4 = scmp.lt.s32.totalorder %s2303_s28, %s2296_s22 }
  0x25   : > { %p2300_p12 = pneg %p2299_p2  ;;  %p2306_p5 = por %p2305_p4, %p2304_p11 }
  0x27   : > { %p2307_p7 = pnand %p2306_p5, %p2300_p12 }
  0x29   : > { %2310 = shalt.err (!%p2307_p7)
}
  0x2a   : > { %s2380_s29 = smov 64   ;;  %s2381_s30 = smov 4  }
  0x2b   : > { %2218 = dma.hbm_to_vmem [thread:$0]  (!%p2483_p13), %s2479_s4, 512, %s2487_s6, %s2489_s8, %s2380_s29, %s2380_s29, %s2381_s30  }
  0x2c   : > { %p2120_p9 = scmp.ge.s32.totalorder %s2377_s15, 1  ;;  %p156_p1 = scmp.lt.s32.totalorder %s2377_s15, 3 }
  0x2e   : > { %p157_p3 = pnand %p2120_p9, %p156_p1 }
  0x2f   : > { %s2520_s5 = sand.u32 (!%p157_p3), 1, %s2369_s13  }
  0x30   : > { %160 = sbr.rel (%p157_p3) target bundleno = 850 (0x352), region = 32  ;;  %s2121_s9 = sshll.u32 (!%p157_p3), %s2520_s5, 5 }
  0x31   : > { %s163_s10 = scalar_lea.sflag (!%p157_p3), [#allocation4], %s2520_s5  ;;  %s2524_s11 = scalar_lea.vmem (!%p157_p3), [#allocation3], %s2121_s9 }
  0x37   : > { %2356 = dma.done.wait (%p2459_p6), %s163_s10, 512  }
  0x38   : > { %2358 = vsyncadd (%p2459_p6), %s163_s10, 4294966784  ;;  %vm190_vm0 = vcmask 142336   ;;  %v2382_v0 = vmov 0   ;;  %vm212_vm1 = vsmask.f32 256  ;;  %s2383_s23 = smov 1  }
  0x39   : > { %195 = vst.msk [vmem:[#allocation2 + $0xc] sm:$0xf] %vm190_vm0, %v2382_v0  ;;  %191 = vst.msk [vmem:[#allocation2] sm:$0xf] %vm190_vm0, %v2382_v0  ;;  %1996 = vmatprep.mubr.bf16.mxu0 %v2382_v0  ;;  %2272 = vset.pattern.permute.xlu0 %v2382_v0  ;;  %vm213_vm2 = vsmask.f32 4368 }
  0x3a   : > { %192 = vst.msk [vmem:[#allocation2 + $0x4] sm:$0xf] %vm190_vm0, %v2382_v0  ;;  %196 = vst.msk [vmem:[#allocation2 + $0x10] sm:$0xf] %vm190_vm0, %v2382_v0  ;;  %v206_v1 = vld [vmem:[%s2524_s11 + $0x8] sm:$0xf] }
  0x3b   : > { %198 = vst.msk [vmem:[#allocation2 + $0x18] sm:$0xf] %vm190_vm0, %v2382_v0  ;;  %199 = vst.msk [vmem:[#allocation2 + $0x1c] sm:$0xf] %vm190_vm0, %v2382_v0  ;;  %v204_v2 = vld [vmem:[%s2524_s11] sm:$0xf] }
  0x3c   : > { %201 = vst.msk [vmem:[#allocation2 + $0x24] sm:$0xf] %vm190_vm0, %v2382_v0  ;;  %202 = vst.msk [vmem:[#allocation2 + $0x28] sm:$0xf] %vm190_vm0, %v2382_v0  ;;  %v207_v3 = vld [vmem:[%s2524_s11 + $0xc] sm:$0xf] }
  0x3d   : > { %v233_v4 = vshrl.u32 %v206_v1, 16  ;;  %v236_v5 = vshll.u32 %v206_v1, 16  ;;  %v216_v6 = vshrl.u32 %v204_v2, 16  ;;  %v219_v7 = vshll.u32 %v204_v2, 16  ;;  %v208_v8 = vld [vmem:[%s2524_s11 + $0x10] sm:$0xf]  ;;  %vm2549_vm3 = vmor %vm212_vm1, %vm213_vm2 }
  0x3e   : > { %v241_v9 = vshrl.u32 %v207_v3, 16  ;;  %v244_v10 = vshll.u32 %v207_v3, 16  ;;  %v250_v11 = vshrl.u32 %v208_v8, 16  ;;  %v253_v12 = vshll.u32 %v208_v8, 16  ;;  %v209_v13 = vld [vmem:[%s2524_s11 + $0x14] sm:$0xf] }
  0x3f   : > { %v235_v14 = vrot.slane %v233_v4, 7  ;;  %v218_v15 = vrot.slane %v216_v6, 7  ;;  %v258_v16 = vshrl.u32 %v209_v13, 16  ;;  %v210_v17 = vld [vmem:[%s2524_s11 + $0x18] sm:$0xf]  ;;  %v261_v20 = vshll.u32 %v209_v13, 16 }
  0x40   : > { %v243_v18 = vrot.slane %v241_v9, 7  ;;  %v252_v19 = vrot.slane %v250_v11, 7  ;;  %v267_v21 = vshrl.u32 %v210_v17, 16  ;;  %v211_v22 = vld [vmem:[%s2524_s11 + $0x1c] sm:$0xf]  ;;  %v270_v31 = vshll.u32 %v210_v17, 16 }
  0x41   : > { %v238_v23 = vor.u32 %v236_v5, %v235_v14  ;;  %v239_v24 = vrot.slane %v235_v14, 4  ;;  %v221_v25 = vor.u32 %v219_v7, %v218_v15  ;;  %v205_v27 = vld [vmem:[%s2524_s11 + $0x4] sm:$0xf]  ;;  %v260_v30 = vrot.slane %v258_v16, 7  ;;  %v332_v55 = vld [vmem:[#allocation2 + $0xc] sm:$0xf] }
  0x42   : > { %v246_v28 = vor.u32 %v244_v10, %v243_v18  ;;  %v255_v29 = vor.u32 %v253_v12, %v252_v19  ;;  %v256_v32 = vrot.slane %v252_v19, 4  ;;  %v269_v33 = vrot.slane %v267_v21, 7  ;;  %v322_v56 = vld [vmem:[#allocation2] sm:$0xf]  ;;  %v339_v61 = vld [vmem:[#allocation2 + $0x18] sm:$0xf] }
  0x43   : > { %289 = vrot.lane.b32.xlu1 %v238_v23, %s2383_s23  ;;  %283 = vrot.lane.b32.xlu0 %v221_v25, %s2383_s23  ;;  %v275_v34 = vshrl.u32 %v211_v22, 16  ;;  %v224_v35 = vshrl.u32 %v205_v27, 16  ;;  %v263_v37 = vor.u32 %v261_v20, %v260_v30  ;;  %v278_v38 = vshll.u32 %v211_v22, 16  ;;  %v346_v1 = vld [vmem:[#allocation2 + $0x24] sm:$0xf]  ;;  %s2384_s4 = smov 127  }
  0x44   : > { %v247_v36 = vsel %vm2549_vm3, %v239_v24, %v246_v28  ;;  %v227_v39 = vshll.u32 %v205_v27, 16  ;;  %vm193_vm4 = vcmask 139264   ;;  %v222_v42 = vrot.slane %v218_v15, 4  ;;  %s2385_s6 = smov 126   ;;  %s2388_s7 = smov 32  }
  0x45   : > { %v277_v40 = vrot.slane %v275_v34, 7  ;;  %v226_v41 = vrot.slane %v224_v35, 7  ;;  %v272_v43 = vor.u32 %v270_v31, %v269_v33  ;;  %197 = vst.msk [vmem:[#allocation2 + $0x14] sm:$0x1] %vm193_vm4, %v2382_v0  ;;  %194 = vst.msk [vmem:[#allocation2 + $0x8] sm:$0x1] %vm193_vm4, %v2382_v0  ;;  %v264_v44 = vsel %vm2549_vm3, %v256_v32, %v263_v37 }
  0x46   : > { %200 = vst.msk [vmem:[#allocation2 + $0x20] sm:$0x1] %vm193_vm4, %v2382_v0  ;;  %203 = vst.msk [vmem:[#allocation2 + $0x2c] sm:$0x1] %vm193_vm4, %v2382_v0  ;;  %v273_v45 = vrot.slane %v269_v33, 4  ;;  %v248_v50 = vrot.slane %v243_v18, 4 }
  0x47   : > { %291 = vrot.lane.b32.xlu1 %v247_v36, %s2383_s23  ;;  %295 = vrot.lane.b32.xlu0 %v255_v29, %s2383_s23  ;;  %v280_v46 = vor.u32 %v278_v38, %v277_v40  ;;  %v229_v47 = vor.u32 %v227_v39, %v226_v41  ;;  %v231_v51 = vrot.slane %v226_v41, 4  ;;  %v282_v52 = vrot.slane %v277_v40, 4  ;;  %s2389_s8 = smov 64   ;;  %s2390_s17 = smov 96  }
  0x48   : > { %v265_v53 = vrot.slane %v260_v30, 4  ;;  %vm319_vm5 = vcmask 134152   ;;  %vm320_vm6 = vsmask.f32 7938  ;;  %vm327_vm8 = vcmask 131080   ;;  %s2391_s19 = smov 16  }
  0x49   : > { %v281_v48 = vsel %vm2549_vm3, %v273_v45, %v280_v46  ;;  %v230_v49 = vsel %vm2549_vm3, %v222_v42, %v229_v47  ;;  %vm2579_vm7 = vmand %vm319_vm5, %vm320_vm6  ;;  %vm548_vm9 = vcmask 1042432   ;;  %vm549_vm10 = vcmask 1046532   ;;  %s2392_s20 = smov 48   ;;  %s2393_s22 = smov 80  }
  0x4a   : > { %vm2614_vm11 = vmand %vm327_vm8, %vm212_vm1  ;;  %vm409_vm13 = vsmask.f32 3328  ;;  %vm410_vm14 = vsmask.f32 7440  ;;  %s2394_s26 = smov 112   ;;  %vm1847_vm0 = vcmask 130048  }
  0x4b   : > { %297 = vrot.lane.b32.xlu1 %v264_v44, %s2383_s23  ;;  %301 = vrot.lane.b32.xlu0 %v272_v43, %s2383_s23  ;;  %vm2620_vm12 = vmor %vm548_vm9, %vm549_vm10  ;;  %vm1857_vm1 = vcmask 261120   ;;  %vm1864_vm2 = vcmask 392192   ;;  %vm1871_vm3 = vcmask 523264   ;;  %vm1878_vm4 = vcmask 654336   ;;  %s2122_s9 = sshll.u32 %s2520_s5, 2  ;;  %s2210_s10 = sshll.u32 %s2437_s16, 6 }
  0x4c   : > { %v336_v16 = vld [vmem:[#allocation2 + $0x14] sm:$0x1]  ;;  %v329_v17 = vld [vmem:[#allocation2 + $0x8] sm:$0x1]  ;;  %vm2708_vm15 = vmor %vm409_vm13, %vm410_vm14  ;;  %vm1892_vm6 = vcmask 916480   ;;  %vm1955_vm8 = vcmask 293888  }
  0x4d   : > { %v350_v31 = vld [vmem:[#allocation2 + $0x2c] sm:$0x1]  ;;  %v343_v32 = vld [vmem:[#allocation2 + $0x20] sm:$0x1]  ;;  %s188_s11 = scalar_lea.vmem [#allocation6], %s2122_s9  ;;  %p3496_p11 = scmp.ne.s32.totalorder %s3479_s24, 0 }
  0x4e   : > { %s2395_s16 = smov [#allocation6]  }
  0x4f   : > { %303 = vrot.lane.b32.xlu1 %v281_v48, %s2383_s23  ;;  %285 = vrot.lane.b32.xlu0 %v230_v49, %s2383_s23 }
  0x53   : > { %293 = vrot.lane.b32.xlu1 %v248_v50, %s2383_s23  ;;  %287 = vrot.lane.b32.xlu0 %v231_v51, %s2383_s23 }
  0x57   : > { %305 = vrot.lane.b32.xlu1 %v282_v52, %s2383_s23  ;;  %299 = vrot.lane.b32.xlu0 %v265_v53, %s2383_s23  ;;  %s2044_s23 = sshll.u32 %s188_s11, 4  ;;  %s3430_s23 = int_to_ptr.vmem [resolvable:$true] %s2044_s23 }
  0xb5   : > { %v290_v57 = vpop.permute.xlu1 %289  ;;  %v284_v58 = vpop.permute.xlu0 %283 }
  0xb6   : > { %v333_v59 = vsel %vm2579_vm7, %v290_v57, %v332_v55  ;;  %v323_v60 = vsel %vm2579_vm7, %v284_v58, %v322_v56 }
  0xb7   : > { %334 = vst [vmem:[#allocation2 + $0xc] sm:$0xf] %v333_v59  ;;  %324 = vst [vmem:[#allocation2] sm:$0xf] %v323_v60 }
  0xb9   : > { %v292_v62 = vpop.permute.xlu1 %291  ;;  %v296_v63 = vpop.permute.xlu0 %295 }
  0xba   : > { %335 = vst.msk [vmem:[#allocation2 + $0x10] sm:$0xf] %vm319_vm5, %v292_v62  ;;  %v340_v0 = vsel %vm2579_vm7, %v296_v63, %v339_v61 }
  0xbb   : > { %341 = vst [vmem:[#allocation2 + $0x18] sm:$0xf] %v340_v0 }
  0xbd   : > { %v298_v2 = vpop.permute.xlu1 %297  ;;  %v302_v3 = vpop.permute.xlu0 %301 }
  0xbe   : > { %342 = vst.msk [vmem:[#allocation2 + $0x1c] sm:$0xf] %vm319_vm5, %v298_v2  ;;  %v347_v4 = vsel %vm2579_vm7, %v302_v3, %v346_v1  ;;  %v2593_v5 = vld [vmem:[#allocation2 + $0xc] sm:$0xf]  ;;  %v2595_v6 = vld [vmem:[#allocation2] sm:$0xf] }
  0xbf   : > { %348 = vst [vmem:[#allocation2 + $0x24] sm:$0xf] %v347_v4  ;;  %v437_v7 = vshrl.u32 %v2593_v5, 16  ;;  %v413_v8 = vshrl.u32 %v2595_v6, 16  ;;  %v611_v12 = vpack.i.b16 %v2593_v5, %v2595_v6  ;;  %v366_v13 = vld [vmem:[#allocation2 + $0xc] sm:$0xe] }
  0xc0   : > { %v2124_v23 = vrot.slane %v366_v13, 9  ;;  %v2625_v25 = vld [vmem:[#allocation2] sm:$0xe]  ;;  %vm1959_vm7 = vcmask 1041408  }
  0xc1   : > { %v304_v9 = vpop.permute.xlu1 %303  ;;  %v286_v10 = vpop.permute.xlu0 %285  ;;  %v2599_v11 = vld [vmem:[#allocation2 + $0x10] sm:$0xf]  ;;  %v2611_v14 = vpack.i.b16 %v437_v7, %v413_v8  ;;  %v2123_v34 = vrot.slane %v2625_v25, 9 }
  0xc2   : > { %349 = vst.msk [vmem:[#allocation2 + $0x28] sm:$0xf] %vm319_vm5, %v304_v9  ;;  %326 = vst.msk [vmem:[#allocation2 + $0x4] sm:$0xf] %vm319_vm5, %v286_v10  ;;  %383 = vrot.lane.b32.xlu1 %v2599_v11, %s2384_s4  ;;  %v446_v18 = vshll.u32 %v2599_v11, 16  ;;  %v450_v19 = vshrl.u32 %v2599_v11, 16 }
  0xc3   : > { %v560_v24 = vrot.slane %v2599_v11, 5  ;;  %v2633_v29 = vld [vmem:[#allocation2 + $0x18] sm:$0xf]  ;;  %vm1885_vm5 = vcmask 785408  }
  0xc4   : > { %v367_v30 = vld [vmem:[#allocation2 + $0x18] sm:$0xe]  ;;  %v2638_v35 = vrot.slane %v446_v18, 5  ;;  %v452_v36 = vrot.slane %v450_v19, 4  ;;  %v461_v41 = vshrl.u32 %v2633_v29, 16 }
  0xc5   : > { %v294_v20 = vpop.permute.xlu1 %293  ;;  %v288_v21 = vpop.permute.xlu0 %287  ;;  %v2635_v33 = vld [vmem:[#allocation2 + $0x1c] sm:$0xf]  ;;  %v2647_v42 = vsel %vm2620_vm12, %v2124_v23, %v560_v24  ;;  %v2125_v43 = vrot.slane %v367_v30, 9  ;;  %v2659_v47 = vrot.slane %v560_v24, 4 }
  0xc6   : > { %v337_v26 = vsel %vm2614_vm11, %v294_v20, %v336_v16  ;;  %v330_v27 = vsel %vm2614_vm11, %v288_v21, %v329_v17  ;;  %v2631_v28 = vld [vmem:[#allocation2 + $0x24] sm:$0xf]  ;;  %v567_v48 = vrot.slane %v2635_v33, 5  ;;  %v453_v55 = vor.u32 %v452_v36, %v2638_v35 }
  0xc7   : > { %338 = vst [vmem:[#allocation2 + $0x14] sm:$0x1] %v337_v26  ;;  %331 = vst [vmem:[#allocation2 + $0x8] sm:$0x1] %v330_v27  ;;  %v615_v44 = vpack.i.b16 %v2631_v28, %v2633_v29  ;;  %v485_v53 = vshrl.u32 %v2631_v28, 16  ;;  %v470_v56 = vshll.u32 %v2635_v33, 16 }
  0xc8   : > { %v368_v54 = vld [vmem:[#allocation2 + $0x24] sm:$0xe]  ;;  %v474_v57 = vshrl.u32 %v2635_v33, 16  ;;  %v2688_v9 = vsel %vm2620_vm12, %v2125_v43, %v567_v48  ;;  %v569_v15 = vrot.slane %v567_v48, 4  ;;  %v454_v21 = vrot.slane %v453_v55, 4 }
  0xc9   : > { %v306_v37 = vpop.permute.xlu1 %305  ;;  %v300_v38 = vpop.permute.xlu0 %299  ;;  %v2640_v39 = vld [vmem:[#allocation2 + $0x28] sm:$0xf]  ;;  %v2642_v40 = vld [vmem:[#allocation2 + $0x4] sm:$0xf]  ;;  %v2126_v4 = vrot.slane %v368_v54, 9  ;;  %v2696_v23 = vrot.slane %v470_v56, 5 }
  0xca   : > { %v351_v45 = vsel %vm2614_vm11, %v306_v37, %v350_v31  ;;  %v344_v46 = vsel %vm2614_vm11, %v300_v38, %v343_v32  ;;  %391 = vrot.lane.b32.xlu1 %v2640_v39, %s2384_s4  ;;  %379 = vrot.lane.b32.xlu0 %v2642_v40, %s2384_s4  ;;  %v494_v49 = vshll.u32 %v2640_v39, 16  ;;  %v498_v50 = vshrl.u32 %v2640_v39, 16 }
  0xcb   : > { %352 = vst [vmem:[#allocation2 + $0x2c] sm:$0x1] %v351_v45  ;;  %345 = vst [vmem:[#allocation2 + $0x20] sm:$0x1] %v344_v46  ;;  %v422_v51 = vshll.u32 %v2642_v40, 16  ;;  %v426_v52 = vshrl.u32 %v2642_v40, 16  ;;  %v743_v2 = vpack.i.b16 %v2599_v11, %v2642_v40  ;;  %v747_v32 = vpack.i.b16 %v2640_v39, %v2635_v33 }
  0xcc   : > { %v574_v58 = vrot.slane %v2640_v39, 5  ;;  %v553_v59 = vrot.slane %v2642_v40, 5  ;;  %v2672_v60 = vrot.slane %v494_v49, 5  ;;  %v500_v61 = vrot.slane %v498_v50, 4 }
  0xcd   : > { %v2680_v0 = vrot.slane %v422_v51, 5  ;;  %v428_v1 = vrot.slane %v426_v52, 4  ;;  %v2684_v3 = vpack.i.b16 %v450_v19, %v426_v52  ;;  %v476_v18 = vrot.slane %v474_v57, 4 }
  0xce   : > { %399 = vrot.lane.b32.xlu1 %v2599_v11, %s2385_s6  ;;  %387 = vrot.lane.b32.xlu0 %v2635_v33, %s2384_s4  ;;  %v362_v62 = vld [vmem:[#allocation2 + $0x14] sm:$0x1]  ;;  %v361_v63 = vld [vmem:[#allocation2 + $0x8] sm:$0x1]  ;;  %v501_v13 = vor.u32 %v500_v61, %v2672_v60  ;;  %v2694_v20 = vsel %vm2620_vm12, %v2126_v4, %v574_v58  ;;  %v2704_v24 = vsel %vm2620_vm12, %v2123_v34, %v553_v59  ;;  %v576_v27 = vrot.slane %v574_v58, 4 }
  0xcf   : > { %v456_v10 = vshll.u32 %v362_v62, 16  ;;  %v429_v16 = vor.u32 %v428_v1, %v2680_v0  ;;  %v432_v17 = vshll.u32 %v361_v63, 16  ;;  %v563_v25 = vrot.slane %v362_v62, 5 }
  0xd0   : > { %v502_v37 = vrot.slane %v501_v13, 4  ;;  %v477_v38 = vor.u32 %v476_v18, %v2696_v23  ;;  %v556_v45 = vrot.slane %v361_v63, 5  ;;  %v703_v55 = vshrl.u32 %v2704_v24, 16 }
  0xd1   : > { %v458_v19 = vrot.slane %v456_v10, 5  ;;  %v430_v46 = vrot.slane %v429_v16, 4  ;;  %v434_v48 = vrot.slane %v432_v17, 5  ;;  %v2728_v56 = vsel %vm2620_vm12, %v2659_v47, %v563_v25 }
  0xd2   : > { %407 = vrot.lane.b32.xlu1 %v2640_v39, %s2385_s6  ;;  %395 = vrot.lane.b32.xlu0 %v2642_v40, %s2385_s6  ;;  %v364_v26 = vld [vmem:[#allocation2 + $0x2c] sm:$0x1]  ;;  %v363_v30 = vld [vmem:[#allocation2 + $0x20] sm:$0x1]  ;;  %v555_v58 = vrot.slane %v553_v59, 4  ;;  %v478_v1 = vrot.slane %v477_v38, 4  ;;  %v2750_v13 = vpack.i.b16 %v498_v50, %v474_v57 }
  0xd3   : > { %v2716_v36 = vsel %vm2708_vm15, %v454_v21, %v458_v19  ;;  %v504_v34 = vshll.u32 %v364_v26, 16  ;;  %v577_v43 = vrot.slane %v364_v26, 5  ;;  %v570_v49 = vrot.slane %v363_v30, 5 }
  0xd4   : > { %v788_v51 = vshrl.u32 %v2716_v36, 16  ;;  %v480_v54 = vshll.u32 %v363_v30, 16  ;;  %v2732_v61 = vsel %vm2708_vm15, %v430_v46, %v434_v48  ;;  %v2745_v47 = vsel %vm2620_vm12, %v555_v58, %v556_v45 }
  0xd5   : > { %v506_v52 = vrot.slane %v504_v34, 5  ;;  %v787_v63 = vshrl.u32 %v2732_v61, 16  ;;  %v2741_v10 = vsel %vm2620_vm12, %v576_v27, %v577_v43  ;;  %v2754_v16 = vsel %vm2620_vm12, %v569_v15, %v570_v49 }
  0xd6   : > { %381 = vrot.lane.b32.xlu1 %v2593_v5, %s2384_s4  ;;  %403 = vrot.lane.b32.xlu0 %v2635_v33, %s2385_s6  ;;  %v482_v4 = vrot.slane %v480_v54, 5  ;;  %v785_v18 = vpack.i.b16 %v2716_v36, %v2732_v61  ;;  %v704_v50 = vshrl.u32 %v2647_v42, 16  ;;  %v712_v22 = vshrl.u32 %v2694_v20, 16 }
  0xd7   : > { %v2736_v62 = vsel %vm2708_vm15, %v502_v37, %v506_v52  ;;  %v2762_v21 = vpack.i.b16 %v788_v51, %v787_v63  ;;  %v836_v15 = vshrl.u32 %v2728_v56, 16  ;;  %v711_v19 = vshrl.u32 %v2688_v9, 16 }
  0xd8   : > { %v796_v59 = vshrl.u32 %v2736_v62, 16  ;;  %v2758_v17 = vsel %vm2708_vm15, %v478_v1, %v482_v4  ;;  %v835_v25 = vshrl.u32 %v2745_v47, 16  ;;  %v2778_v26 = vpack.i.b16 %v485_v53, %v461_v41 }
  0xd9   : > { %v795_v57 = vshrl.u32 %v2758_v17, 16  ;;  %v844_v27 = vshrl.u32 %v2741_v10, 16  ;;  %v843_v30 = vshrl.u32 %v2754_v16, 16  ;;  %v701_v34 = vpack.i.b16 %v2647_v42, %v2704_v24 }
  0xda   : > { %389 = vrot.lane.b32.xlu1 %v2631_v28, %s2384_s4  ;;  %377 = vrot.lane.b32.xlu0 %v2595_v6, %s2384_s4  ;;  %v2786_v38 = vpack.i.b16 %v704_v50, %v703_v55  ;;  %v709_v43 = vpack.i.b16 %v2694_v20, %v2688_v9  ;;  %v2794_v45 = vpack.i.b16 %v712_v22, %v711_v19  ;;  %v440_v52 = vshll.u32 %v2593_v5, 16 }
  0xdb   : > { %v2782_v37 = vpack.i.b16 %v796_v59, %v795_v57  ;;  %v833_v46 = vpack.i.b16 %v2728_v56, %v2745_v47  ;;  %v2798_v48 = vpack.i.b16 %v836_v15, %v835_v25  ;;  %v841_v49 = vpack.i.b16 %v2741_v10, %v2754_v16 }
  0xdc   : > { %v2802_v51 = vpack.i.b16 %v844_v27, %v843_v30  ;;  %v439_v54 = vrot.slane %v437_v7, 4  ;;  %v442_v55 = vrot.slane %v440_v52, 5  ;;  %v488_v58 = vshll.u32 %v2631_v28, 16 }
  0xdd   : > { %v416_v63 = vshll.u32 %v2595_v6, 16  ;;  %v487_v4 = vrot.slane %v485_v53, 4  ;;  %v464_v50 = vshll.u32 %v2633_v29, 16  ;;  %v415_v7 = vrot.slane %v413_v8, 4 }
  0xde   : > { %397 = vrot.lane.b32.xlu1 %v2593_v5, %s2385_s6  ;;  %385 = vrot.lane.b32.xlu0 %v2633_v29, %s2384_s4  ;;  %v443_v1 = vor.u32 %v442_v55, %v439_v54  ;;  %v490_v59 = vrot.slane %v488_v58, 5  ;;  %v463_v19 = vrot.slane %v461_v41, 4 }
  0xdf   : > { %v418_v22 = vrot.slane %v416_v63, 5  ;;  %v466_v25 = vrot.slane %v464_v50, 5 }
  0xe0   : > { %v444_v57 = vrot.slane %v443_v1, 4  ;;  %v491_v15 = vor.u32 %v490_v59, %v487_v4 }
  0xe1   : > { %v419_v53 = vor.u32 %v418_v22, %v415_v7  ;;  %v467_v30 = vor.u32 %v466_v25, %v463_v19 }
  0xe2   : > { %405 = vrot.lane.b32.xlu1 %v2631_v28, %s2385_s6  ;;  %393 = vrot.lane.b32.xlu0 %v2595_v6, %s2385_s6  ;;  %v2871_v27 = vsel %vm2708_vm15, %v444_v57, %v2638_v35  ;;  %v492_v8 = vrot.slane %v491_v15, 4 }
  0xe3   : > { %v420_v41 = vrot.slane %v419_v53, 4  ;;  %v468_v35 = vrot.slane %v467_v30, 4 }
  0xe4   : > { %v2880_v52 = vsel %vm2708_vm15, %v492_v8, %v2672_v60 }
  0xe5   : > { %v2885_v54 = vsel %vm2708_vm15, %v420_v41, %v2680_v0  ;;  %v2894_v55 = vsel %vm2708_vm15, %v468_v35, %v2696_v23  ;;  %v2386_v0 = vmov 1983009808   ;;  %v879_v23 = vlaneseq }
  0xe6   : > { %583 = vrot.lane.b32.xlu1 %v2647_v42, %s2384_s4  ;;  %401 = vrot.lane.b32.xlu0 %v2633_v29, %s2385_s6  ;;  %v877_v31 = vunpack.c.l.s4 %v2386_v0  ;;  %v2387_v35 = vmov 1934713408  }
  0xe7   : > { %v880_v4 = vshrl.u32 %v879_v23, 7  ;;  %v894_v0 = vunpack.c.l.s4 %v2387_v35 }
  0xe8   : > { %v878_v1 = vunpack.c.0.s8 %v877_v31 }
  0xe9   : > { %v895_v33 = vunpack.c.0.s8 %v894_v0 }
  0xea   : > { %591 = vrot.lane.b32.xlu1 %v2694_v20, %s2384_s4  ;;  %579 = vrot.lane.b32.xlu0 %v2704_v24, %s2384_s4  ;;  %v2906_v25 = vsub.s32 %v878_v1, %v880_v4 }
  0xee   : > { %585 = vrot.lane.b32.xlu1 %v2728_v56, %s2384_s4  ;;  %587 = vrot.lane.b32.xlu0 %v2688_v9, %s2384_s4 }
  0xf2   : > { %593 = vrot.lane.b32.xlu1 %v2741_v10, %s2384_s4  ;;  %595 = vrot.lane.b32.xlu0 %v2704_v24, %s2385_s6 }
  0xf6   : > { %597 = vrot.lane.b32.xlu1 %v2745_v47, %s2385_s6  ;;  %599 = vrot.lane.b32.xlu0 %v2647_v42, %s2385_s6 }
  0xfa   : > { %601 = vrot.lane.b32.xlu1 %v2728_v56, %s2385_s6  ;;  %603 = vrot.lane.b32.xlu0 %v2688_v9, %s2385_s6 }
  0xfe   : > { %605 = vrot.lane.b32.xlu1 %v2754_v16, %s2385_s6  ;;  %607 = vrot.lane.b32.xlu0 %v2694_v20, %s2385_s6 }
 0x102   : > { %609 = vrot.lane.b32.xlu1 %v2741_v10, %s2385_s6  ;;  %581 = vrot.lane.b32.xlu0 %v2745_v47, %s2384_s4 }
 0x106   : > { %514 = vrot.lane.b32.xlu1 %v2716_v36, %s2384_s4  ;;  %589 = vrot.lane.b32.xlu0 %v2754_v16, %s2384_s4 }
 0x10a   : > { %522 = vrot.lane.b32.xlu1 %v2736_v62, %s2384_s4  ;;  %510 = vrot.lane.b32.xlu0 %v2732_v61, %s2384_s4 }
 0x10e   : > { %530 = vrot.lane.b32.xlu1 %v2716_v36, %s2385_s6  ;;  %518 = vrot.lane.b32.xlu0 %v2758_v17, %s2384_s4  ;;  %v2927_v36 = vsub.s32 %v895_v33, %v880_v4  ;;  %v653_v4 = vpack.i.b16 %v2871_v27, %v2885_v54 }
 0x112   : > { %538 = vrot.lane.b32.xlu1 %v2736_v62, %s2385_s6  ;;  %526 = vrot.lane.b32.xlu0 %v2732_v61, %s2385_s6 }
 0x116   : > { %512 = vrot.lane.b32.xlu1 %v2871_v27, %s2384_s4  ;;  %534 = vrot.lane.b32.xlu0 %v2758_v17, %s2385_s6 }
 0x11a   : > { %520 = vrot.lane.b32.xlu1 %v2880_v52, %s2384_s4  ;;  %508 = vrot.lane.b32.xlu0 %v2885_v54, %s2384_s4 }
 0x11e   : > { %528 = vrot.lane.b32.xlu1 %v2871_v27, %s2385_s6  ;;  %516 = vrot.lane.b32.xlu0 %v2894_v55, %s2384_s4 }
 0x122   : > { %536 = vrot.lane.b32.xlu1 %v2880_v52, %s2385_s6  ;;  %524 = vrot.lane.b32.xlu0 %v2885_v54, %s2385_s6 }
 0x126   : > { %532 = vrot.lane.b32.xlu0 %v2894_v55, %s2385_s6 }
 0x134   : > { %v384_v60 = vpop.permute.xlu1 %383 }
 0x135   : > { %v756_v7 = vshrl.u32 %v384_v60, 16 }
 0x13c   : > { %v392_v58 = vpop.permute.xlu1 %391  ;;  %v380_v63 = vpop.permute.xlu0 %379 }
 0x13d   : > { %v753_v59 = vpack.i.b16 %v384_v60, %v380_v63  ;;  %v755_v50 = vshrl.u32 %v380_v63, 16  ;;  %v764_v22 = vshrl.u32 %v392_v58, 16 }
 0x13f   : > { %v757_v57 = vpack.i.b16 %v756_v7, %v755_v50  ;;  %v1215_v53 = vcombine.low %v743_v2, %v753_v59 }
 0x140   : > { %v400_v15 = vpop.permute.xlu1 %399  ;;  %v388_v19 = vpop.permute.xlu0 %387 }
 0x141   : > { %v761_v8 = vpack.i.b16 %v392_v58, %v388_v19  ;;  %v763_v30 = vshrl.u32 %v388_v19, 16  ;;  %v1249_v60 = vcombine.low %v2684_v3, %v757_v57  ;;  %v1222_v1 = vrot.slane %v1215_v53, %v2906_v25 }
 0x142   : > { %v772_v40 = vshrl.u32 %v400_v15, 16  ;;  %v793_v53 = vpack.i.b16 %v2736_v62, %v2758_v17 }
 0x143   : > { %v1223_v41 = vcombine.low %v747_v32, %v761_v8  ;;  %v765_v31 = vpack.i.b16 %v764_v22, %v763_v30  ;;  %v1256_v39 = vrot.slane %v1249_v60, %v2906_v25 }
 0x144   : > { %v408_v23 = vpop.permute.xlu1 %407  ;;  %v396_v63 = vpop.permute.xlu0 %395 }
 0x145   : > { %v1230_v50 = vrot.slane %v1223_v41, %v2906_v25  ;;  %v769_v7 = vpack.i.b16 %v400_v15, %v396_v63  ;;  %v771_v11 = vshrl.u32 %v396_v63, 16  ;;  %v1257_v2 = vcombine.low %v2750_v13, %v765_v31 }
 0x146   : > { %v780_v8 = vshrl.u32 %v408_v23, 16 }
 0x147   : > { %v1231_v58 = vcombine.low %v1222_v1, %v1230_v50  ;;  %v1232_v59 = vcombine.high %v1222_v1, %v1230_v50  ;;  %v1264_v32 = vrot.slane %v1257_v2, %v2906_v25  ;;  %v773_v3 = vpack.i.b16 %v772_v40, %v771_v11 }
 0x148   : > { %v1283_v22 = vcombine.low %v769_v7, %v785_v18  ;;  %v382_v57 = vpop.permute.xlu1 %381  ;;  %v404_v19 = vpop.permute.xlu0 %403 }
 0x149   : > { %v777_v15 = vpack.i.b16 %v408_v23, %v404_v19  ;;  %v779_v13 = vshrl.u32 %v404_v19, 16  ;;  %v1265_v30 = vcombine.low %v1256_v39, %v1264_v32  ;;  %v1266_v35 = vcombine.high %v1256_v39, %v1264_v32 }
 0x14a   : > { %v1290_v0 = vrot.slane %v1283_v22, %v2906_v25  ;;  %v1317_v60 = vcombine.low %v773_v3, %v2762_v21  ;;  %v624_v61 = vshrl.u32 %v382_v57, 16  ;;  %v2938_v33 = vrot.slane %v1231_v58, %v2927_v36 }
 0x14b   : > { %v1291_v41 = vcombine.low %v777_v15, %v793_v53  ;;  %v781_v31 = vpack.i.b16 %v780_v8, %v779_v13  ;;  %v2944_v22 = vrot.slane %v1232_v59, %v2927_v36  ;;  %v2957_v5 = vrot.slane %v1265_v30, %v2927_v36 }
 0x14c   : > { %v390_v63 = vpop.permute.xlu1 %389  ;;  %v378_v1 = vpop.permute.xlu0 %377  ;;  %v1324_v40 = vrot.slane %v1317_v60, %v2906_v25  ;;  %v2974_v30 = vrot.slane %v1266_v35, %v2927_v36 }
 0x14d   : > { %v1298_v18 = vrot.slane %v1291_v41, %v2906_v25  ;;  %v621_v50 = vpack.i.b16 %v382_v57, %v378_v1  ;;  %v623_v62 = vshrl.u32 %v378_v1, 16  ;;  %v1325_v17 = vcombine.low %v781_v31, %v2782_v37 }
 0x14e   : > { %v632_v32 = vshrl.u32 %v390_v63, 16 }
 0x14f   : > { %v1299_v23 = vcombine.low %v1290_v0, %v1298_v18  ;;  %v1300_v7 = vcombine.high %v1290_v0, %v1298_v18  ;;  %v625_v11 = vpack.i.b16 %v624_v61, %v623_v62  ;;  %v1332_v2 = vrot.slane %v1325_v17, %v2906_v25 }
 0x150   : > { %v2933_v21 = vpop.permute.xlu1 %397  ;;  %v386_v39 = vpop.permute.xlu0 %385  ;;  %v875_v37 = vcombine.low %v611_v12, %v621_v50 }
 0x151   : > { %v629_v3 = vpack.i.b16 %v390_v63, %v386_v39  ;;  %v631_v57 = vshrl.u32 %v386_v39, 16  ;;  %v2947_v19 = vrot.slane %v1299_v23, %v2927_v36  ;;  %v2950_v53 = vrot.slane %v1300_v7, %v2927_v36 }
 0x152   : > { %v1333_v15 = vcombine.low %v1324_v40, %v1332_v2  ;;  %v909_v58 = vcombine.low %v2611_v14, %v625_v11  ;;  %v1334_v6 = vcombine.high %v1324_v40, %v1332_v2  ;;  %v882_v28 = vrot.slane %v875_v37, %v2906_v25 }
 0x153   : > { %v883_v8 = vcombine.low %v615_v44, %v629_v3  ;;  %v633_v12 = vpack.i.b16 %v632_v32, %v631_v57  ;;  %v2198_v41 = vcombine.high %v2938_v33, %v2947_v19  ;;  %v2163_v0 = vcombine.low %v2944_v22, %v2950_v53 }
 0x154   : > { %v2959_v59 = vpop.permute.xlu1 %405  ;;  %v2961_v13 = vpop.permute.xlu0 %393  ;;  %v2204_v14 = vcombine.high %v2944_v22, %v2950_v53  ;;  %v2979_v31 = vrot.slane %v1333_v15, %v2927_v36  ;;  %v2982_v63 = vrot.slane %v1334_v6, %v2927_v36  ;;  %v2987_v61 = vrot.slane %v909_v58, %v2906_v25 }
 0x155   : > { %v890_v29 = vrot.slane %v883_v8, %v2906_v25  ;;  %v637_v44 = vpack.i.b16 %v2933_v21, %v2961_v13  ;;  %v917_v60 = vcombine.low %v2778_v26, %v633_v12  ;;  %1746 = vrot.lane.b32.xlu0 %v2198_v41, %s2388_s7  ;;  %v661_v40 = vpack.i.b16 %v2880_v52, %v2894_v55 }
 0x156   : > { %v2154_v23 = vcombine.low %v2957_v5, %v2979_v31  ;;  %v2201_v7 = vcombine.high %v2957_v5, %v2979_v31  ;;  %v2166_v11 = vcombine.low %v2974_v30, %v2982_v63 }
 0x157   : > { %v891_v18 = vcombine.low %v882_v28, %v890_v29  ;;  %v892_v35 = vcombine.high %v882_v28, %v890_v29  ;;  %v943_v50 = vcombine.low %v637_v44, %v653_v4  ;;  %v2990_v26 = vrot.slane %v917_v60, %v2906_v25 }
 0x158   : > { %v584_v62 = vpop.permute.xlu1 %583  ;;  %v2992_v17 = vpop.permute.xlu0 %401 }
 0x159   : > { %v645_v2 = vpack.i.b16 %v2959_v59, %v2992_v17  ;;  %1784 = vrot.lane.b32.xlu0 %v2163_v0, %s2389_s8  ;;  %v925_v39 = vcombine.low %v2987_v61, %v2990_v26  ;;  %v926_v32 = vcombine.high %v2987_v61, %v2990_v26  ;;  %v950_v3 = vrot.slane %v943_v50, %v2906_v25 }
 0x15a   : > { %v720_v58 = vshrl.u32 %v584_v62, 16  ;;  %v3020_v37 = vrot.slane %v891_v18, %v2927_v36  ;;  %v906_v9 = vrot.slane %v892_v35, %v2927_v36  ;;  %v647_v35 = vshrl.u32 %v2992_v17, 16 }
 0x15b   : > { %v951_v4 = vcombine.low %v645_v2, %v661_v40  ;;  %v663_v17 = vshrl.u32 %v2894_v55, 16 }
 0x15c   : > { %v592_v57 = vpop.permute.xlu1 %591  ;;  %v580_v15 = vpop.permute.xlu0 %579 }
 0x15d   : > { %v958_v8 = vrot.slane %v951_v4, %v2906_v25  ;;  %v717_v6 = vpack.i.b16 %v584_v62, %v580_v15  ;;  %v719_v12 = vshrl.u32 %v580_v15, 16  ;;  %v728_v2 = vshrl.u32 %v592_v57, 16 }
 0x15f   : > { %v959_v41 = vcombine.low %v950_v3, %v958_v8  ;;  %v721_v0 = vpack.i.b16 %v720_v58, %v719_v12  ;;  %v960_v28 = vcombine.high %v950_v3, %v958_v8  ;;  %v1079_v60 = vcombine.low %v701_v34, %v717_v6 }
 0x160   : > { %v3013_v29 = vpop.permute.xlu1 %585  ;;  %v588_v44 = vpop.permute.xlu0 %587 }
 0x161   : > { %v1113_v40 = vcombine.low %v2786_v38, %v721_v0  ;;  %v725_v50 = vpack.i.b16 %v592_v57, %v588_v44  ;;  %v727_v1 = vshrl.u32 %v588_v44, 16  ;;  %v3023_v62 = vrot.slane %v959_v41, %v2927_v36 }
 0x162   : > { %v974_v34 = vrot.slane %v960_v28, %v2927_v36  ;;  %v3036_v38 = vrot.slane %v1079_v60, %v2906_v25  ;;  %v664_v28 = vshrl.u32 %v2880_v52, 16  ;;  %v648_v44 = vshrl.u32 %v2959_v59, 16 }
 0x163   : > { %v1087_v4 = vcombine.low %v709_v43, %v725_v50  ;;  %v729_v3 = vpack.i.b16 %v728_v2, %v727_v1  ;;  %v2186_v24 = vcombine.high %v3020_v37, %v3023_v62  ;;  %v3051_v58 = vrot.slane %v1113_v40, %v2906_v25 }
 0x164   : > { %v3028_v15 = vpop.permute.xlu1 %593  ;;  %v3030_v42 = vpop.permute.xlu0 %595  ;;  %v2139_v12 = vcombine.low %v906_v9, %v974_v34  ;;  %v639_v60 = vshrl.u32 %v2961_v13, 16  ;;  %v655_v2 = vshrl.u32 %v2885_v54, 16  ;;  %v656_v59 = vshrl.u32 %v2871_v27, 16 }
 0x165   : > { %v3039_v18 = vrot.slane %v1087_v4, %v2906_v25  ;;  %v1121_v57 = vcombine.low %v2794_v45, %v729_v3  ;;  %1600 = vrot.lane.b32.xlu1 %v2186_v24, %s2388_s7  ;;  %v640_v4 = vshrl.u32 %v2933_v21, 16  ;;  %v649_v3 = vpack.i.b16 %v648_v44, %v647_v35 }
 0x166   : > { %v665_v24 = vpack.i.b16 %v664_v28, %v663_v17  ;;  %v657_v20 = vpack.i.b16 %v656_v59, %v655_v2 }
 0x167   : > { %v1095_v43 = vcombine.low %v3036_v38, %v3039_v18  ;;  %v1096_v1 = vcombine.high %v3036_v38, %v3039_v18  ;;  %v3054_v8 = vrot.slane %v1121_v57, %v2906_v25  ;;  %v641_v13 = vpack.i.b16 %v640_v4, %v639_v60 }
 0x168   : > { %v3056_v45 = vpop.permute.xlu1 %597  ;;  %v600_v6 = vpop.permute.xlu0 %599  ;;  %v985_v21 = vcombine.low %v649_v3, %v665_v24 }
 0x169   : > { %1638 = vrot.lane.b32.xlu1 %v2139_v12, %s2389_s8  ;;  %v1129_v41 = vcombine.low %v3051_v58, %v3054_v8  ;;  %v1130_v0 = vcombine.high %v3051_v58, %v3054_v8  ;;  %v733_v52 = vpack.i.b16 %v600_v6, %v3030_v42  ;;  %v2192_v12 = vcombine.high %v906_v9, %v974_v34  ;;  %v1949_v58 = vld [vmem:[%s3474_s2] sm:$0x3] }
 0x16a   : > { %v977_v53 = vcombine.low %v641_v13, %v657_v20  ;;  %v735_v60 = vshrl.u32 %v600_v6, 16  ;;  %v3086_v34 = vrot.slane %v985_v21, %v2906_v25  ;;  %v852_v9 = vshrl.u32 %v3013_v29, 16 }
 0x16b   : > { %v1154_v35 = vrot.slane %v733_v52, %v2906_v25  ;;  %v734_v52 = vshrl.u32 %v3030_v42, 16  ;;  %v860_v42 = vshrl.u32 %v3028_v15, 16 }
 0x16c   : > { %v3067_v40 = vpop.permute.xlu1 %601  ;;  %v604_v50 = vpop.permute.xlu0 %603  ;;  %v984_v13 = vrot.slane %v977_v53, %v2906_v25 }
 0x16d   : > { %1822 = vrot.lane.b32.xlu1 %v2204_v14, %s2390_s17  ;;  %v740_v28 = vshrl.u32 %v604_v50, 16 }
 0x170   : > { %v3078_v57 = vpop.permute.xlu1 %605  ;;  %v608_v54 = vpop.permute.xlu0 %607 }
 0x171   : > { %v739_v55 = vpack.i.b16 %v608_v54, %v604_v50  ;;  %1676 = vrot.lane.b32.xlu1 %v2192_v12, %s2390_s17  ;;  %v741_v44 = vshrl.u32 %v608_v54, 16  ;;  %v736_v12 = vpack.i.b16 %v735_v60, %v734_v52 }
 0x173   : > { %v1162_v22 = vrot.slane %v739_v55, %v2906_v25  ;;  %v742_v59 = vpack.i.b16 %v741_v44, %v740_v28  ;;  %v993_v44 = vcombine.low %v984_v13, %v3086_v34 }
 0x174   : > { %v3083_v14 = vpop.permute.xlu1 %609  ;;  %v582_v27 = vpop.permute.xlu0 %581 }
 0x175   : > { %v1163_v17 = vcombine.low %v1154_v35, %v1162_v22  ;;  %v1164_v4 = vcombine.high %v1154_v35, %v1162_v22  ;;  %v849_v2 = vpack.i.b16 %v3013_v29, %v582_v27  ;;  %v851_v3 = vshrl.u32 %v582_v27, 16 }
 0x176   : > { %v3106_v22 = vrot.slane %v742_v59, %v2906_v25  ;;  %v1001_v16 = vrot.slane %v993_v44, %v2927_v36  ;;  %v933_v59 = vrot.slane %v925_v39, %v2927_v36 }
 0x177   : > { %v1178_v20 = vrot.slane %v1164_v4, %v2927_v36  ;;  %v853_v24 = vpack.i.b16 %v852_v9, %v851_v3  ;;  %v3096_v54 = vrot.slane %v1163_v17, %v2927_v36  ;;  %v1419_v29 = vcombine.low %v833_v46, %v849_v2 }
 0x178   : > { %v3093_v6 = vpop.permute.xlu1 %514  ;;  %v590_v50 = vpop.permute.xlu0 %589 }
 0x179   : > { %v857_v55 = vpack.i.b16 %v3028_v15, %v590_v50  ;;  %v1453_v21 = vcombine.low %v2798_v48, %v853_v24  ;;  %v859_v35 = vshrl.u32 %v590_v50, 16  ;;  %v2194_v27 = vcombine.high %v1178_v20, %v1178_v20 }
 0x17a   : > { %v2188_v56 = vcombine.high %v3096_v54, %v3096_v54  ;;  %v3118_v48 = vrot.slane %v736_v12, %v2906_v25  ;;  %v3121_v60 = vrot.slane %v1419_v29, %v2906_v25  ;;  %v2141_v9 = vcombine.low %v1178_v20, %v1178_v20 }
 0x17b   : > { %v1427_v53 = vcombine.low %v841_v49, %v857_v55  ;;  %v861_v47 = vpack.i.b16 %v860_v42, %v859_v35  ;;  %1680 = vrot.lane.b32.xlu0 %v2194_v27, %s2390_s17  ;;  %v2130_v20 = vcombine.low %v933_v59, %v1001_v16  ;;  %v994_v35 = vcombine.high %v984_v13, %v3086_v34 }
 0x17c   : > { %v3113_v46 = vpop.permute.xlu1 %522  ;;  %v3115_v15 = vpop.permute.xlu0 %510  ;;  %1604 = vrot.lane.b32.xlu1 %v2188_v56, %s2388_s7  ;;  %v1198_v49 = vcombine.high %v3118_v48, %v3106_v22 }
 0x17d   : > { %v3124_v28 = vrot.slane %v1427_v53, %v2906_v25  ;;  %v1461_v10 = vcombine.low %v2802_v51, %v861_v47  ;;  %v3144_v51 = vrot.slane %v1453_v21, %v2906_v25  ;;  %v801_v55 = vpack.i.b16 %v3093_v6, %v3115_v15 }
 0x17e   : > { %v3156_v24 = vrot.slane %v1198_v49, %v2927_v36  ;;  %v2189_v21 = vcombine.high %v933_v59, %v1001_v16  ;;  %v1008_v56 = vrot.slane %v994_v35, %v2927_v36  ;;  %v940_v16 = vrot.slane %v926_v32, %v2927_v36 }
 0x17f   : > { %v1435_v17 = vcombine.low %v3121_v60, %v3124_v28  ;;  %v1436_v4 = vcombine.high %v3121_v60, %v3124_v28  ;;  %v3137_v2 = vrot.slane %v1461_v10, %v2906_v25  ;;  %1727 = vrot.lane.b32.xlu0 %v2154_v23, %s2391_s19  ;;  %v871_v49 = vpack.i.b16 %v3083_v14, %v3078_v57 }
 0x180   : > { %v3139_v3 = vpop.permute.xlu1 %530  ;;  %v3141_v52 = vpop.permute.xlu0 %518  ;;  %1642 = vrot.lane.b32.xlu1 %v2141_v9, %s2389_s8  ;;  %v2144_v42 = vcombine.low %v3156_v24, %v3156_v24  ;;  %v2142_v59 = vcombine.low %v940_v16, %v1008_v56  ;;  %v1197_v32 = vcombine.low %v3118_v48, %v3106_v22  ;;  %v867_v48 = vshrl.u32 %v3067_v40, 16 }
 0x181   : > { %v1469_v50 = vcombine.low %v3144_v51, %v3137_v2  ;;  %v1470_v23 = vcombine.high %v3144_v51, %v3137_v2  ;;  %v809_v5 = vpack.i.b16 %v3113_v46, %v3141_v52  ;;  %v3220_v61 = vrot.slane %v1435_v17, %v2927_v36 }
 0x182   : > { %v873_v17 = vshrl.u32 %v3083_v14, 16  ;;  %v2197_v2 = vcombine.high %v3156_v24, %v3156_v24 }
 0x183   : > { %1765 = vrot.lane.b32.xlu0 %v2201_v7, %s2392_s20 }
 0x184   : > { %v3160_v12 = vpop.permute.xlu1 %538  ;;  %v3162_v29 = vpop.permute.xlu0 %526  ;;  %1581 = vrot.lane.b32.xlu1 %v2130_v20, %s2391_s19 }
 0x185   : > { %v817_v39 = vpack.i.b16 %v3139_v3, %v3162_v29 }
 0x187   : > { %v1351_v31 = vcombine.low %v801_v55, %v817_v39  ;;  %1661 = vrot.lane.b32.xlu0 %v2144_v42, %s2393_s22  ;;  %v865_v39 = vpack.i.b16 %v3067_v40, %v3056_v45  ;;  %v1502_v55 = vrot.slane %v871_v49, %v2906_v25 }
 0x188   : > { %v3178_v44 = vpop.permute.xlu1 %512  ;;  %v3180_v53 = vpop.permute.xlu0 %534  ;;  %1619 = vrot.lane.b32.xlu1 %v2189_v21, %s2392_s20 }
 0x189   : > { %v825_v7 = vpack.i.b16 %v3160_v12, %v3180_v53  ;;  %v3194_v47 = vrot.slane %v1351_v31, %v2906_v25  ;;  %v3492_v31 = vcombine.high %v2974_v30, %v2982_v63 }
 0x18b   : > { %v1359_v27 = vcombine.low %v809_v5, %v825_v7  ;;  %v1494_v5 = vrot.slane %v865_v39, %v2906_v25  ;;  %v2195_v7 = vcombine.high %v940_v16, %v1008_v56 }
 0x18c   : > { %v3189_v34 = vpop.permute.xlu1 %520  ;;  %v3191_v13 = vpop.permute.xlu0 %508  ;;  %1803 = vrot.lane.b32.xlu1 %v2166_v11, %s2393_s22 }
 0x18d   : > { %v3197_v10 = vrot.slane %v1359_v27, %v2906_v25  ;;  %v872_v27 = vshrl.u32 %v3078_v57, 16  ;;  %v1503_v49 = vcombine.low %v1494_v5, %v1502_v55  ;;  %v669_v14 = vpack.i.b16 %v3178_v44, %v3191_v13 }
 0x18f   : > { %v1367_v9 = vcombine.low %v3194_v47, %v3197_v10  ;;  %v874_v39 = vpack.i.b16 %v873_v17, %v872_v27  ;;  %v3252_v21 = vrot.slane %v1503_v49, %v2927_v36  ;;  %v1504_v27 = vcombine.high %v1494_v5, %v1502_v55 }
 0x190   : > { %v3211_v20 = vpop.permute.xlu0 %516  ;;  %1657 = vrot.lane.b32.xlu1 %v2142_v59, %s2393_s22  ;;  %v3222_v26 = vpop.permute.xlu1 %528  ;;  %v866_v59 = vshrl.u32 %v3056_v45, 16  ;;  %v1368_v49 = vcombine.high %v3194_v47, %v3197_v10  ;;  %v804_v55 = vshrl.u32 %v3093_v6, 16  ;;  %v811_v5 = vshrl.u32 %v3141_v52, 16 }
 0x191   : > { %v3217_v11 = vrot.slane %v1367_v9, %v2927_v36  ;;  %v1205_v9 = vrot.slane %v1197_v32, %v2927_v36  ;;  %v3255_v32 = vrot.slane %v874_v39, %v2906_v25  ;;  %v828_v39 = vshrl.u32 %v3160_v12, 16 }
 0x192   : > { %v868_v56 = vpack.i.b16 %v867_v48, %v866_v59  ;;  %v3265_v48 = vrot.slane %v1095_v43, %v2927_v36  ;;  %v2200_v59 = vcombine.high %v3252_v21, %v3252_v21  ;;  %v820_v6 = vshrl.u32 %v3139_v3, 16 }
 0x193   : > { %v2199_v42 = vcombine.high %v3217_v11, %v3220_v61  ;;  %v2132_v16 = vcombine.low %v1205_v9, %v1205_v9  ;;  %v1518_v52 = vrot.slane %v1504_v27, %v2927_v36  ;;  %v679_v27 = vshrl.u32 %v3211_v20, 16 }
 0x194   : > { %v3231_v35 = vpop.permute.xlu0 %524  ;;  %1841 = vrot.lane.b32.xlu1 %v3492_v31, %s2394_s26  ;;  %v537_v30 = vpop.permute.xlu1 %536  ;;  %v677_v31 = vpack.i.b16 %v3189_v34, %v3211_v20  ;;  %v688_v28 = vshrl.u32 %v3222_v26, 16  ;;  %v1110_v20 = vrot.slane %v1096_v1, %v2927_v36 }
 0x195   : > { %v685_v22 = vpack.i.b16 %v3222_v26, %v3231_v35  ;;  %1748 = vrot.lane.b32.xlu0 %v2199_v42, %s2388_s7  ;;  %v2165_v60 = vcombine.low %v1518_v52, %v1518_v52 }
 0x197   : > { %v1011_v42 = vcombine.low %v669_v14, %v685_v22  ;;  %v827_v22 = vshrl.u32 %v3180_v53, 16  ;;  %v803_v53 = vshrl.u32 %v3115_v15, 16  ;;  %v2191_v15 = vcombine.high %v1205_v9, %v1205_v9 }
 0x198   : > { %v533_v63 = vpop.permute.xlu0 %532  ;;  %1695 = vrot.lane.b32.xlu1 %v2195_v7, %s2394_s26  ;;  %v3268_v7 = vrot.slane %v868_v56, %v2906_v25 }
 0x199   : > { %v693_v40 = vpack.i.b16 %v537_v30, %v533_v63  ;;  %v1018_v45 = vrot.slane %v1011_v42, %v2906_v25  ;;  %v819_v42 = vshrl.u32 %v3162_v29, 16  ;;  %v829_v10 = vpack.i.b16 %v828_v39, %v827_v22 }
 0x19a   : > { %v1537_v43 = vcombine.low %v3268_v7, %v3255_v32  ;;  %v680_v22 = vshrl.u32 %v3189_v34, 16  ;;  %v2206_v34 = vcombine.high %v1518_v52, %v1518_v52  ;;  %v1538_v1 = vcombine.high %v3268_v7, %v3255_v32 }
 0x19b   : > { %v1019_v57 = vcombine.low %v677_v31, %v693_v40  ;;  %v812_v31 = vshrl.u32 %v3113_v46, 16  ;;  %v695_v40 = vshrl.u32 %v533_v63, 16  ;;  %v1382_v46 = vrot.slane %v1368_v49, %v2927_v36 }
 0x19c   : > { %1585 = vrot.lane.b32.xlu1 %v2132_v16, %s2391_s19  ;;  %v1450_v16 = vrot.slane %v1436_v4, %v2927_v36  ;;  %v821_v9 = vpack.i.b16 %v820_v6, %v819_v42  ;;  %v696_v63 = vshrl.u32 %v537_v30, 16  ;;  %v671_v49 = vshrl.u32 %v3191_v13, 16 }
 0x19d   : > { %v1026_v17 = vrot.slane %v1019_v57, %v2906_v25  ;;  %v805_v57 = vpack.i.b16 %v804_v55, %v803_v53  ;;  %v813_v29 = vpack.i.b16 %v812_v31, %v811_v5  ;;  %v672_v30 = vshrl.u32 %v3178_v44, 16 }
 0x19e   : > { %v697_v4 = vpack.i.b16 %v696_v63, %v695_v40  ;;  %v681_v55 = vpack.i.b16 %v680_v22, %v679_v27  ;;  %v1545_v13 = vrot.slane %v1537_v43, %v2927_v36  ;;  %v2205_v6 = vcombine.high %v1382_v46, %v1450_v16 }
 0x19f   : > { %v1027_v14 = vcombine.low %v1018_v45, %v1026_v17  ;;  %v1028_v12 = vcombine.high %v1018_v45, %v1026_v17  ;;  %v687_v45 = vshrl.u32 %v3231_v35, 16  ;;  %v1393_v17 = vcombine.low %v813_v29, %v829_v10 }
 0x1a0   : > { %1750 = vrot.lane.b32.xlu1 %v2200_v59, %s2388_s7  ;;  %v1385_v35 = vcombine.low %v805_v57, %v821_v9  ;;  %v673_v5 = vpack.i.b16 %v672_v30, %v671_v49  ;;  %v1053_v39 = vcombine.low %v681_v55, %v697_v4  ;;  %v2156_v42 = vcombine.low %v1545_v13, %v1545_v13 }
 0x1a1   : > { %v3284_v47 = vrot.slane %v1027_v14, %v2927_v36  ;;  %v2164_v14 = vcombine.low %v1382_v46, %v1450_v16  ;;  %v1042_v59 = vrot.slane %v1028_v12, %v2927_v36  ;;  %v689_v53 = vpack.i.b16 %v688_v28, %v687_v45 }
 0x1a2   : > { %v1400_v26 = vrot.slane %v1393_v17, %v2906_v25  ;;  %v1392_v38 = vrot.slane %v1385_v35, %v2906_v25  ;;  %v1060_v44 = vrot.slane %v1053_v39, %v2906_v25  ;;  %v2203_v52 = vcombine.high %v1545_v13, %v1545_v13 }
 0x1a3   : > { %v2187_v56 = vcombine.high %v3284_v47, %v3265_v48  ;;  %v2128_v3 = vcombine.low %v3284_v47, %v3265_v48  ;;  %v2140_v31 = vcombine.low %v1042_v59, %v1110_v20  ;;  %v1045_v18 = vcombine.low %v673_v5, %v689_v53 }
 0x1a4   : > { %1623 = vrot.lane.b32.xlu1 %v2191_v15, %s2392_s20  ;;  %v1401_v43 = vcombine.low %v1392_v38, %v1400_v26  ;;  %v1552_v15 = vrot.slane %v1538_v1, %v2927_v36  ;;  %v2193_v40 = vcombine.high %v1042_v59, %v1110_v20  ;;  %v1137_v57 = vrot.slane %v1129_v41, %v2927_v36 }
 0x1a5   : > { %1602 = vrot.lane.b32.xlu0 %v2187_v56, %s2388_s7  ;;  %v1052_v10 = vrot.slane %v1045_v18, %v2906_v25  ;;  %v1477_v25 = vrot.slane %v1469_v50, %v2927_v36  ;;  %v1402_v9 = vcombine.high %v1392_v38, %v1400_v26  ;;  %v1484_v41 = vrot.slane %v1470_v23, %v2927_v36  ;;  %s3428_s7 = scalar_lea.hbm %s3475_s3, %s2210_s10 }
 0x1a6   : > { %v1409_v12 = vrot.slane %v1401_v43, %v2927_v36  ;;  %v2168_v32 = vcombine.low %v1552_v15, %v1552_v15  ;;  %v2209_v29 = vcombine.high %v1552_v15, %v1552_v15  ;;  %v1144_v49 = vrot.slane %v1130_v0, %v2927_v36 }
 0x1a7   : > { %v1061_v56 = vcombine.low %v1052_v10, %v1060_v44  ;;  %v1416_v63 = vrot.slane %v1402_v9, %v2927_v36  ;;  %v1062_v45 = vcombine.high %v1052_v10, %v1060_v44  ;;  %v3493_v53 = vcombine.low %v2938_v33, %v2947_v19 }
 0x1a8   : > { %1788 = vrot.lane.b32.xlu1 %v2165_v60, %s2389_s8  ;;  %v2155_v7 = vcombine.low %v1409_v12, %v1477_v25  ;;  %v2202_v50 = vcombine.high %v1409_v12, %v1477_v25 }
 0x1a9   : > { %1786 = vrot.lane.b32.xlu0 %v2164_v14, %s2389_s8  ;;  %v1069_v46 = vrot.slane %v1061_v56, %v2927_v36  ;;  %v2167_v17 = vcombine.low %v1416_v63, %v1484_v41  ;;  %v1076_v22 = vrot.slane %v1062_v45, %v2927_v36  ;;  %v2208_v28 = vcombine.high %v1416_v63, %v1484_v41 }
 0x1ab   : > { %v2131_v16 = vcombine.low %v1069_v46, %v1137_v57  ;;  %v2190_v27 = vcombine.high %v1069_v46, %v1137_v57  ;;  %v2143_v60 = vcombine.low %v1076_v22, %v1144_v49  ;;  %v2196_v4 = vcombine.high %v1076_v22, %v1144_v49 }
 0x1ac   : > { %1826 = vrot.lane.b32.xlu1 %v2206_v34, %s2390_s17 }
 0x1ad   : > { %1640 = vrot.lane.b32.xlu0 %v2140_v31, %s2389_s8  ;;  %v3494_v31 = vcombine.low %v3020_v37, %v3023_v62  ;;  %s2030_s8 = scalar_lea.sflag [#allocation5], %s2520_s5 }
 0x1b0   : > { %1731 = vrot.lane.b32.xlu1 %v2156_v42, %s2391_s19 }
 0x1b1   : > { %1824 = vrot.lane.b32.xlu0 %v2205_v6, %s2390_s17 }
 0x1b4   : > { %1769 = vrot.lane.b32.xlu1 %v2203_v52, %s2392_s20 }
 0x1b5   : > { %1678 = vrot.lane.b32.xlu0 %v2193_v40, %s2390_s17  ;;  %v2129_v40 = vcombine.low %v3096_v54, %v3096_v54  ;;  %s2311_s17 = scalar_lea.vmem %s3430_s23, 64 }
 0x1b6   : > { %p2312_p6 = scmp.ne.s32.totalorder %s3430_s23, %s2311_s17 }
 0x1b8   : > { %1807 = vrot.lane.b32.xlu1 %v2168_v32, %s2393_s22  ;;  %p2313_p12 = pnand %p2312_p6, %p3496_p11 }
 0x1b9   : > { %1729 = vrot.lane.b32.xlu0 %v2155_v7, %s2391_s19 }
 0x1ba   : > { %p2314_p13 = pneg %p2313_p12 }
 0x1bc   : > { %1845 = vrot.lane.b32.xlu1 %v2209_v29, %s2394_s26 }
 0x1bd   : > { %1583 = vrot.lane.b32.xlu0 %v2131_v16, %s2391_s19  ;;  %s2315_s19 = sshll.u32 %s2395_s16, 4  ;;  %s2316_s19 = int_to_ptr.vmem [resolvable:$false] %s2315_s19 }
 0x1be   : > { %p2318_p8 = scmp.lt.s32.totalorder %s3430_s23, %s2316_s19 }
 0x1c1   : > { %1767 = vrot.lane.b32.xlu0 %v2202_v50, %s2392_s20 }
 0x1c5   : > { %1621 = vrot.lane.b32.xlu0 %v2190_v27, %s2392_s20  ;;  %s2317_s20 = scalar_lea.vmem %s2316_s19, 128 }
 0x1c6   : > { %p2319_p10 = scmp.lt.s32.totalorder %s2317_s20, %s2311_s17 }
 0x1c7   : > { %v1747_v0 = vpop.permute.xlu0 %1746 }
 0x1c8   : > { %p2320_p0 = por %p2319_p10, %p2318_p8 }
 0x1c9   : > { %1805 = vrot.lane.b32.xlu0 %v2167_v17, %s2393_s22  ;;  %v2153_v17 = vcombine.low %v3252_v21, %v3252_v21 }
 0x1ca   : > { %p2321_p2 = pnand %p2320_p0, %p2314_p13 }
 0x1cb   : > { %v1785_v14 = vpop.permute.xlu0 %1784 }
 0x1cd   : > { %1659 = vrot.lane.b32.xlu0 %v2143_v60, %s2393_s22 }
 0x1d1   : > { %1843 = vrot.lane.b32.xlu0 %v2208_v28, %s2394_s26 }
 0x1d5   : > { %1697 = vrot.lane.b32.xlu0 %v2196_v4, %s2394_s26 }
 0x1d7   : > { %v1601_v51 = vpop.permute.xlu1 %1600 }
 0x1d9   : > { %1699 = vrot.lane.b32.xlu0 %v2197_v2, %s2394_s26 }
 0x1db   : > { %v1639_v36 = vpop.permute.xlu1 %1638 }
 0x1dd   : > { %1952 = vperm.xlu0 %2272, %v1949_v58  }
 0x1df   : > { %v1823_v8 = vpop.permute.xlu1 %1822 }
 0x1e3   : > { %v1677_v23 = vpop.permute.xlu1 %1676 }
 0x1ed   : > { %v1681_v20 = vpop.permute.xlu0 %1680 }
 0x1ee   : > { %v1605_v59 = vpop.permute.xlu1 %1604 }
 0x1f1   : > { %v1728_v30 = vpop.permute.xlu0 %1727 }
 0x1f2   : > { %v1643_v35 = vpop.permute.xlu1 %1642  ;;  %v1903_v34 = vsel %vm1847_vm0, %v3493_v53, %v1728_v30  ;;  %v3495_v30 = vcombine.low %v3217_v11, %v3220_v61 }
 0x1f3   : > { %v1911_v26 = vsel %vm1857_vm1, %v1903_v34, %v1747_v0 }
 0x1f5   : > { %v1766_v13 = vpop.permute.xlu0 %1765 }
 0x1f6   : > { %v1582_v55 = vpop.permute.xlu1 %1581  ;;  %v1917_v39 = vsel %vm1864_vm2, %v1911_v26, %v1766_v13 }
 0x1f7   : > { %v1850_v38 = vsel %vm1847_vm0, %v3494_v31, %v1582_v55  ;;  %v1923_v33 = vsel %vm1871_vm3, %v1917_v39, %v1785_v14 }
 0x1f8   : > { %v1859_v18 = vsel %vm1857_vm1, %v1850_v38, %v1601_v51 }
 0x1f9   : > { %v1662_v12 = vpop.permute.xlu0 %1661 }
 0x1fa   : > { %v1620_v24 = vpop.permute.xlu1 %1619 }
 0x1fb   : > { %v1866_v1 = vsel %vm1864_vm2, %v1859_v18, %v1620_v24 }
 0x1fc   : > { %v1873_v42 = vsel %vm1871_vm3, %v1866_v1, %v1639_v36 }
 0x1fe   : > { %v1804_v5 = vpop.permute.xlu1 %1803 }
 0x1ff   : > { %v1929_v44 = vsel %vm1878_vm4, %v1923_v33, %v1804_v5 }
 0x200   : > { %v1935_v37 = vsel %vm1885_vm5, %v1929_v44, %v1823_v8 }
 0x202   : > { %v1658_v19 = vpop.permute.xlu1 %1657 }
 0x203   : > { %v1880_v62 = vsel %vm1878_vm4, %v1873_v42, %v1658_v19 }
 0x204   : > { %v1887_v15 = vsel %vm1885_vm5, %v1880_v62, %v1677_v23 }
 0x206   : > { %v1842_v6 = vpop.permute.xlu1 %1841 }
 0x207   : > { %v1941_v43 = vsel %vm1892_vm6, %v1935_v37, %v1842_v6  ;;  %v1749_v7 = vpop.permute.xlu0 %1748  ;;  %v1948_v6 = vld [vmem:[%s3473_s1] sm:$0x1] }
 0x208   : > { %1964 = vmatprep.subr.bf16.mxu0 %v1941_v43 }
 0x20a   : > { %v1696_v10 = vpop.permute.xlu1 %1695 }
 0x20b   : > { %v1894_v52 = vsel %vm1892_vm6, %v1887_v15, %v1696_v10 }
 0x20c   : > { %1965 = vmatpush1.bf16.msra.mxu0 %v1894_v52 }
 0x20e   : > { %v1586_v56 = vpop.permute.xlu1 %1585 }
 0x20f   : > { %v1856_v25 = vsel %vm1847_vm0, %v2129_v40, %v1586_v56 }
 0x210   : > { %v1863_v32 = vsel %vm1857_vm1, %v1856_v25, %v1605_v59 }
 0x212   : > { %v1751_v46 = vpop.permute.xlu1 %1750 }
 0x216   : > { %v1624_v57 = vpop.permute.xlu1 %1623 }
 0x217   : > { %v1603_v29 = vpop.permute.xlu0 %1602  ;;  %v1870_v16 = vsel %vm1864_vm2, %v1863_v32, %v1624_v57 }
 0x218   : > { %v1877_v50 = vsel %vm1871_vm3, %v1870_v16, %v1643_v35 }
 0x219   : > { %v1884_v9 = vsel %vm1878_vm4, %v1877_v50, %v1662_v12 }
 0x21a   : > { %v1789_v27 = vpop.permute.xlu1 %1788  ;;  %v1891_v54 = vsel %vm1885_vm5, %v1884_v9, %v1681_v20 }
 0x21b   : > { %v1787_v63 = vpop.permute.xlu0 %1786 }
 0x21e   : > { %v1827_v45 = vpop.permute.xlu1 %1826 }
 0x21f   : > { %v1641_v41 = vpop.permute.xlu0 %1640 }
 0x222   : > { %v1732_v22 = vpop.permute.xlu1 %1731 }
 0x223   : > { %v1825_v49 = vpop.permute.xlu0 %1824  ;;  %v1909_v60 = vsel %vm1847_vm0, %v2153_v17, %v1732_v22 }
 0x224   : > { %v1915_v28 = vsel %vm1857_vm1, %v1909_v60, %v1751_v46 }
 0x226   : > { %v1770_v4 = vpop.permute.xlu1 %1769 }
 0x227   : > { %v1679_v2 = vpop.permute.xlu0 %1678  ;;  %v1921_v51 = vsel %vm1864_vm2, %v1915_v28, %v1770_v4 }
 0x228   : > { %v1927_v58 = vsel %vm1871_vm3, %v1921_v51, %v1789_v27 }
 0x22a   : > { %v1808_v36 = vpop.permute.xlu1 %1807 }
 0x22b   : > { %v1730_v8 = vpop.permute.xlu0 %1729  ;;  %v1933_v0 = vsel %vm1878_vm4, %v1927_v58, %v1808_v36 }
 0x22c   : > { %v1939_v23 = vsel %vm1885_vm5, %v1933_v0, %v1827_v45  ;;  %v1906_v55 = vsel %vm1847_vm0, %v3495_v30, %v1730_v8 }
 0x22d   : > { %v1913_v34 = vsel %vm1857_vm1, %v1906_v55, %v1749_v7 }
 0x22e   : > { %v1846_v38 = vpop.permute.xlu1 %1845 }
 0x22f   : > { %v1584_v14 = vpop.permute.xlu0 %1583  ;;  %v1947_v19 = vsel %vm1892_vm6, %v1939_v23, %v1846_v38 }
 0x230   : > { %v1853_v21 = vsel %vm1847_vm0, %v2128_v3, %v1584_v14 }
 0x231   : > { %v1861_v59 = vsel %vm1857_vm1, %v1853_v21, %v1603_v29 }
 0x233   : > { %v1768_v20 = vpop.permute.xlu0 %1767 }
 0x234   : > { %v1919_v48 = vsel %vm1864_vm2, %v1913_v34, %v1768_v20 }
 0x235   : > { %v1925_v47 = vsel %vm1871_vm3, %v1919_v48, %v1787_v63 }
 0x237   : > { %v1622_v35 = vpop.permute.xlu0 %1621 }
 0x238   : > { %v1868_v24 = vsel %vm1864_vm2, %v1861_v59, %v1622_v35 }
 0x239   : > { %v1875_v53 = vsel %vm1871_vm3, %v1868_v24, %v1641_v41 }
 0x23b   : > { %v1806_v13 = vpop.permute.xlu0 %1805 }
 0x23c   : > { %v1931_v26 = vsel %vm1878_vm4, %v1925_v47, %v1806_v13 }
 0x23d   : > { %v1937_v39 = vsel %vm1885_vm5, %v1931_v26, %v1825_v49 }
 0x23f   : > { %v1660_v3 = vpop.permute.xlu0 %1659 }
 0x240   : > { %v1882_v5 = vsel %vm1878_vm4, %v1875_v53, %v1660_v3 }
 0x241   : > { %v1889_v11 = vsel %vm1885_vm5, %v1882_v5, %v1679_v2 }
 0x243   : > { %v1844_v61 = vpop.permute.xlu0 %1843 }
 0x244   : > { %v1944_v31 = vsel %vm1892_vm6, %v1937_v39, %v1844_v61 }
 0x245   : > { %1966 = vmatprep.subr.bf16.mxu0 %v1944_v31 }
 0x247   : > { %v1698_v18 = vpop.permute.xlu0 %1697 }
 0x248   : > { %v1897_v33 = vsel %vm1892_vm6, %v1889_v11, %v1698_v18 }
 0x249   : > { %1967 = vmatpush1.bf16.msra.mxu0 %v1897_v33 }
 0x24a   : > { %2175 = vmatprep.subr.msk.bf16.mxu0 %vm1959_vm7, %v1947_v19 }
 0x24b   : > { %v1700_v1 = vpop.permute.xlu0 %1699 }
 0x24c   : > { %v1900_v44 = vsel %vm1892_vm6, %v1891_v54, %v1700_v1 }
 0x24d   : > { %v1960_v42 = vsel %vm1959_vm7, %v1900_v44, 0 }
 0x24e   : > { %1969 = vmatpush1.bf16.msra.mxu0 %v1960_v42 }
 0x251   : > { %2176 = vmatmul.mubr.msk.bf16.vlgmr.msra.gmra.mrb[0].mxu0 %vm1955_vm8, %v1948_v6 }
 0x25c   : > { %v1953_v37 = vpop.permute.xlu0 %1952 }
 0x324   : > { %v1998_v62 = vpop.f32.mrb[0].mxu0 }
 0x325   : > { %v1999_v43 = vadd.f32 %v1998_v62, %v1953_v37  ;;  %v2000_v10 = vpop.f32.mrb[1].mxu0 }
 0x326   : > { %v2001_v15 = vadd.f32 %v2000_v10, %v1953_v37  ;;  %v2002_v52 = vpop.f32.mrb[2].mxu0 }
 0x327   : > { %v2177_v40 = vmul.f32 -1.442695, %v1999_v43  ;;  %v2003_v12 = vpop.f32.mrb[3].mxu0 }
 0x328   : > { %v2178_v56 = vmul.f32 -1.442695, %v2001_v15 }
 0x329   : > { %2273 = vpow2.f32 %v2177_v40 }
 0x32a   : > { %2275 = vpow2.f32 %v2178_v56 }
 0x333   : > { %v2274_v25 = vpop.eup %2273 }
 0x334   : > { %v2276_v32 = vpop.eup %2275  ;;  %v2011_v7 = vadd.f32 1.0, %v2274_v25 }
 0x335   : > { %v2012_v46 = vadd.f32 1.0, %v2276_v32 }
 0x336   : > { %2277 = vrcp.f32 %v2011_v7 }
 0x337   : > { %2279 = vrcp.f32 %v2012_v46 }
 0x340   : > { %v2278_v57 = vpop.eup %2277 }
 0x341   : > { %v2280_v29 = vpop.eup %2279 }
 0x342   : > { %v2019_v16 = vcombine.low %v2278_v57, %v2280_v29 }
 0x344   : > { %2179 = vst.sshfl [vmem:[%s188_s11] sm:$0x33 pattern:$0x76325410] %v2019_v16 }
 0x345   : > { %2324 = shalt.err (!%p2321_p2)
}
 0x346   : > { %s2325_s5 = scalar_lea.hbm %s3428_s7, 64  ;;  %s2329_s27 = scalar_lea.hbm %s3475_s3, 128 }
 0x347   : > { %p2326_p4 = scmp.ne.s32.totalorder %s3428_s7, %s2325_s5  ;;  %p2330_p9 = scmp.lt.u32.totalorder %s3428_s7, %s3475_s3 }
 0x348   : > { %p2331_p1 = scmp.lt.u32.totalorder %s2329_s27, %s2325_s5  ;;  %p2333_p6 = scmp.lt.u32.totalorder %s2325_s5, %s3428_s7 }
 0x349   : > { %p2327_p5 = pnand %p2326_p4, %p3496_p11 }
 0x34a   : > { %p2332_p3 = por %p2331_p1, %p2330_p9 }
 0x34b   : > { %p2328_p7 = pneg %p2327_p5 }
 0x34c   : > { %p2334_p12 = por %p2333_p6, %p2332_p3 }
 0x34e   : > { %p2335_p13 = pnand %p2334_p12, %p2328_p7 }
 0x350   : > { %2338 = shalt.err (!%p2335_p13)
}
 0x351   : > { %2213 = dma.vmem_to_hbm [thread:$0]  (%p3496_p11), %s3430_s23, 64, %s3428_s7, %s2030_s8  }
 0x352 PF: > { %s2056_s30 = sand.u32 1, %s2365_s12   ;;  %p3497_p8 = scmp.ne.s32.totalorder %s3480_s25, 0 }
 0x353   : > { %p3498_p10 = scmp.ge.s32.totalorder %s2377_s15, 2  ;;  %s2057_s9 = scalar_lea.sflag [#allocation5], %s2056_s30 }
 0x355   : > { %p2220_p0 = pnand %p3498_p10, %p3497_p8 }
 0x357   : > { %2360 = dma.done.wait (!%p2220_p0), %s2057_s9, 64  }
 0x358   : > { %2362 = vsyncadd (!%p2220_p0), %s2057_s9, 4294967232  ;;  %p16_p2 = scmp.ge.s32.totalorder %s2441_s18, 4   ;;  %s3499_s12 = smov %s2369_s13 }
 0x359   : > { %s3500_s13 = smov %s2373_s14  ;;  %s3501_s14 = smov %s2453_s21 }
 0x35a   : > { %s3502_s15 = smov %s2441_s18  ;;  %18 = sbr.rel (!%p16_p2) target bundleno = 5 (0x5), region = 77 }
 0x361   :  { %2062 = vsyncpa [#allocation4], 1 }
 0x362   :  { %2064 = vsyncpa [#allocation4 + $0x1], 1 }
 0x363   :  { %2065 = vsyncpa [#allocation5], 1 }
 0x364   :  { %2067 = vsyncpa [#allocation5 + $0x1], 1 }

</bundles_post_ra>
